<compile_context>
chip_gen: v7x
topology: tpu7x:2x2x1
jax: 0.10.0
libtpu: 0.0.40
codegen_flags: <defaults>
</compile_context>

<pallas_src>
import functools

import jax
import jax.numpy as jnp
from jax import lax
from jax.experimental import pallas as pl
from jax.experimental.pallas import tpu as pltpu

KH = KW = 3
CIN = 256          # fixed by the module (in_channels=256)
COUT = 64          # fixed by the module (out_channels=64)
COUT_PAD = 128     # lane-dense output channels (extra channels zero, sliced off)
PAD_ROWS = 8       # zero guard rows in front/back of the padded buffer (aligned)


def conv3x3_kernel(x_ref, w_ref, b_ref, o_ref, xpad_ref, xl_ref, xr_ref,
                   *, height, width, nw):
    # x_ref:    (M, Cin)            bf16  input rows ordered (h, n, w)
    # w_ref:    (9*Cin, COUT_PAD)   bf16  rows ordered (kh, kw, ci)
    # b_ref:    (1, COUT_PAD)       f32
    # o_ref:    (M, COUT_PAD)       f32   rows ordered (h, n, w)
    # xpad_ref: (2*PAD + (H+2)*NW, Cin) f32  H-halo padded stack + zero guards
    # xl_ref:   ((H+2)*NW, Cin)     bf16  w-1 shifted (boundary-masked) source
    # xr_ref:   ((H+2)*NW, Cin)     bf16  w+1 shifted (boundary-masked) source
    cin = x_ref.shape[1]
    m = height * nw                     # output rows (= N*H*W)
    rows = (height + 2) * nw            # rows of the logical H-padded stack
    pad = PAD_ROWS

    # ---- fill the H-halo padded buffer: halo-only zeroing, aligned stores ----
    halo = jnp.zeros((pad + nw, cin), jnp.float32)
    xpad_ref[pl.ds(0, pad + nw), :] = halo                       # guard + top halo
    xpad_ref[pl.ds(pad + nw, m), :] = x_ref[...].astype(jnp.float32)
    xpad_ref[pl.ds(pad + nw + m, nw + pad), :] = halo            # bottom halo + guard

    # ---- build the +-1 w-shifted sources once (2 realigning slices, 2 masks) ----
    iota = lax.broadcasted_iota(jnp.int32, (rows, 1), 0)
    if (width & (width - 1)) == 0:
        col = iota & (width - 1)        # w coordinate of each (i, n, w) row
    else:
        col = iota % width
    left_src = xpad_ref[pl.ds(pad - 1, rows), :]       # row r <- padded row r-1
    xl_ref[...] = jnp.where(col == 0, 0.0, left_src).astype(xl_ref.dtype)
    right_src = xpad_ref[pl.ds(pad + 1, rows), :]      # row r <- padded row r+1
    xr_ref[...] = jnp.where(col == width - 1, 0.0, right_src).astype(xr_ref.dtype)

    # ---- 9 accumulating bf16 MXU matmuls; bias folded into the accumulator ----
    acc = jnp.broadcast_to(b_ref[...], (m, COUT_PAD)).astype(jnp.float32)
    for kh in range(KH):
        base = kh * nw                  # aligned sublane-block offset per kh tap
        taps = (
            (0, xl_ref[pl.ds(base, m), :]),
            (1, xpad_ref[pl.ds(pad + base, m), :].astype(jnp.bfloat16)),
            (2, xr_ref[pl.ds(base, m), :]),
        )
        for kw, lhs in taps:
            tap = kh * KW + kw
            acc = acc + jnp.dot(lhs, w_ref[pl.ds(tap * cin, cin), :],
                                preferred_element_type=jnp.float32)

    o_ref[...] = acc                    # lane-dense (M, 128) f32 store


def pack_conv_params(weight, bias):
    """One-time repack of PyTorch-layout conv params into MXU matmul form."""
    cout, cin, kh, kw = weight.shape
    w_mat = jnp.transpose(weight, (2, 3, 1, 0)).reshape(kh * kw * cin, cout)
    w_mat = jnp.pad(w_mat, ((0, 0), (0, COUT_PAD - cout))).astype(jnp.bfloat16)
    b_pad = jnp.pad(bias, (0, COUT_PAD - cout)).astype(jnp.float32)
    return w_mat, b_pad.reshape(1, COUT_PAD)


@jax.jit
def conv2d_3x3_pallas(x_nchw, w_mat, b_pad):
    """x_nchw: (N, 256, H, W) f32; prepacked w_mat (2304, 128) bf16, b_pad (1, 128) f32."""
    n, cin, height, width = x_nchw.shape
    nw = n * width
    m = height * nw
    kdim = KH * KW * cin
    rows = (height + 2) * nw
    total_rows = rows + 2 * PAD_ROWS

    # (N,C,H,W) -> rows ordered (h, n, w) x channels, bf16 (one fused XLA copy).
    x2 = jnp.transpose(x_nchw, (2, 0, 3, 1)).reshape(m, cin).astype(jnp.bfloat16)

    kernel = functools.partial(conv3x3_kernel, height=height, width=width, nw=nw)

    cost = pl.CostEstimate(
        flops=2 * m * kdim * COUT_PAD,
        transcendentals=0,
        bytes_accessed=(x2.size * 2 + w_mat.size * 2 + b_pad.size * 4
                        + m * COUT_PAD * 4),
    )

    out_flat = pl.pallas_call(
        kernel,
        out_shape=jax.ShapeDtypeStruct((m, COUT_PAD), jnp.float32),
        grid_spec=pltpu.PrefetchScalarGridSpec(
            num_scalar_prefetch=0,
            grid=(1,),                 # whole problem in one step; VMEM is ample
            in_specs=[
                pl.BlockSpec((m, cin), lambda i: (0, 0)),
                pl.BlockSpec((kdim, COUT_PAD), lambda i: (0, 0)),
                pl.BlockSpec((1, COUT_PAD), lambda i: (0, 0)),
            ],
            out_specs=pl.BlockSpec((m, COUT_PAD), lambda i: (0, 0)),
            scratch_shapes=[
                pltpu.VMEM((total_rows, cin), jnp.float32),   # H-halo padded input
                pltpu.VMEM((rows, cin), jnp.bfloat16),        # w-1 shifted source
                pltpu.VMEM((rows, cin), jnp.bfloat16),        # w+1 shifted source
            ],
        ),
        compiler_params=pltpu.CompilerParams(
            dimension_semantics=("arbitrary",),
        ),
        cost_estimate=cost,
    )(x2, w_mat, b_pad)

    # rows (h, n, w) -> NCHW; drop the padded output channels.
    out = out_flat.reshape(height, n, width, COUT_PAD)[:, :, :, :COUT]
    return jnp.transpose(out, (1, 3, 0, 2)).astype(x_nchw.dtype)


def reference_conv(x_nchw, weight, bias):
    out = lax.conv_general_dilated(
        x_nchw, weight,
        window_strides=(1, 1),
        padding=((1, 1), (1, 1)),
        dimension_numbers=("NCHW", "OIHW", "NCHW"),
    )
    return out + bias.reshape(1, -1, 1, 1)


if __name__ == "__main__":
    key = jax.random.PRNGKey(0)
    k_x, k_w, k_b = jax.random.split(key, 3)

    N, H, W = 2, 8, 8                 # channel dims fixed by the module: 256 -> 64

    # Deterministic parameter init (kaiming-uniform-ish bounds, like nn.Conv2d).
    fan_in = CIN * KH * KW
    bound = 1.0 / (fan_in ** 0.5)
    weight = jax.random.uniform(k_w, (COUT, CIN, KH, KW), jnp.float32, -bound, bound)
    bias = jax.random.uniform(k_b, (COUT,), jnp.float32, -bound, bound)
    x = jax.random.normal(k_x, (N, CIN, H, W), jnp.float32)

    # One-time parameter repacking (init-time, outside the per-call path).
    w_mat, b_pad = jax.block_until_ready(pack_conv_params(weight, bias))

    out = jax.block_until_ready(conv2d_3x3_pallas(x, w_mat, b_pad))

    ref = jax.block_until_ready(reference_conv(x, weight, bias))
    assert out.shape == (N, COUT, H, W)
    # bf16 MXU operands with f32 accumulation: loosened tolerance vs f32 reference.
    assert jnp.allclose(out, ref, atol=2e-2, rtol=2e-2), \
        float(jnp.max(jnp.abs(out - ref)))

    print("KERNEL_OK")
</pallas_src>

<mosaic_0001>
module attributes {stable_mosaic.version = 11 : i64} {
  func.func @conv3x3_kernel(%arg0: i32, %arg1: memref<128x256xbf16, #tpu.memory_space<vmem>>, %arg2: memref<2304x128xbf16, #tpu.memory_space<vmem>>, %arg3: memref<1x128xf32, #tpu.memory_space<vmem>>, %arg4: memref<128x128xf32, #tpu.memory_space<vmem>>, %arg5: memref<176x256xf32, #tpu.memory_space<vmem>>, %arg6: memref<160x256xbf16, #tpu.memory_space<vmem>>, %arg7: memref<160x256xbf16, #tpu.memory_space<vmem>>) attributes {dimension_semantics = [#tpu.dimension_semantics<arbitrary>], iteration_bounds = array<i64: 1>, scalar_prefetch = 0 : i64, scratch_operands = 3 : i64, tpu.core_type = #tpu.core_type<tc>, window_params = [{pipeline_mode = #tpu.pipeline_mode<synchronous>, transform_indices = @transform_0, window_bounds = array<i64: 128, 256>}, {pipeline_mode = #tpu.pipeline_mode<synchronous>, transform_indices = @transform_1, window_bounds = array<i64: 2304, 128>}, {pipeline_mode = #tpu.pipeline_mode<synchronous>, transform_indices = @transform_2, window_bounds = array<i64: 1, 128>}, {pipeline_mode = #tpu.pipeline_mode<synchronous>, transform_indices = @transform_3, window_bounds = array<i64: 128, 128>}]} {
    %cst = arith.constant 0.000000e+00 : f32
    %0 = vector.broadcast %cst : f32 to vector<24x256xf32>
    %c0 = arith.constant 0 : index
    %c0_0 = arith.constant 0 : index
    %1 = vector.load %arg5[%c0, %c0_0] : memref<176x256xf32, #tpu.memory_space<vmem>>, vector<24x256xf32>
    tpu.vector_store %arg5[%c0, %c0_0], %0 {strides = array<i32>} : memref<176x256xf32, #tpu.memory_space<vmem>>, vector<24x256xf32>,
    %c0_1 = arith.constant 0 : index
    %c0_2 = arith.constant 0 : index
    %2 = vector.load %arg1[%c0_1, %c0_2] : memref<128x256xbf16, #tpu.memory_space<vmem>>, vector<128x256xbf16>
    %3 = arith.extf %2 : vector<128x256xbf16> to vector<128x256xf32>
    %c24 = arith.constant 24 : index
    %c0_3 = arith.constant 0 : index
    %4 = vector.load %arg5[%c24, %c0_3] : memref<176x256xf32, #tpu.memory_space<vmem>>, vector<128x256xf32>
    tpu.vector_store %arg5[%c24, %c0_3], %3 {strides = array<i32>} : memref<176x256xf32, #tpu.memory_space<vmem>>, vector<128x256xf32>,
    %c152 = arith.constant 152 : index
    %c0_4 = arith.constant 0 : index
    %5 = vector.load %arg5[%c152, %c0_4] : memref<176x256xf32, #tpu.memory_space<vmem>>, vector<24x256xf32>
    tpu.vector_store %arg5[%c152, %c0_4], %0 {strides = array<i32>} : memref<176x256xf32, #tpu.memory_space<vmem>>, vector<24x256xf32>,
    %6 = tpu.iota {dimensions = array<i32: 0>} : vector<160x1xi32>
    %c7_i32 = arith.constant 7 : i32
    %7 = vector.broadcast %c7_i32 : i32 to vector<160x1xi32>
    %8 = arith.andi %6, %7 : vector<160x1xi32>
    %c7 = arith.constant 7 : index
    %c0_5 = arith.constant 0 : index
    %9 = vector.load %arg5[%c7, %c0_5] : memref<176x256xf32, #tpu.memory_space<vmem>>, vector<160x256xf32>
    %c0_i32 = arith.constant 0 : i32
    %10 = vector.broadcast %c0_i32 : i32 to vector<160x1xi32>
    %11 = arith.cmpi eq, %8, %10 : vector<160x1xi32>
    %cst_6 = arith.constant 0.000000e+00 : f32
    %12 = vector.shape_cast %11 : vector<160x1xi1> to vector<160x1xi1>
    %13 = vector.broadcast %12 : vector<160x1xi1> to vector<160x256xi1>
    %14 = vector.broadcast %cst_6 : f32 to vector<160x256xf32>
    %15 = arith.select %13, %14, %9 : vector<160x256xi1>, vector<160x256xf32>
    %16 = arith.truncf %15 : vector<160x256xf32> to vector<160x256xbf16>
    %c0_7 = arith.constant 0 : index
    %c0_8 = arith.constant 0 : index
    %17 = vector.load %arg6[%c0_7, %c0_8] : memref<160x256xbf16, #tpu.memory_space<vmem>>, vector<160x256xbf16>
    tpu.vector_store %arg6[%c0_7, %c0_8], %16 {strides = array<i32>} : memref<160x256xbf16, #tpu.memory_space<vmem>>, vector<160x256xbf16>,
    %c9 = arith.constant 9 : index
    %c0_9 = arith.constant 0 : index
    %18 = vector.load %arg5[%c9, %c0_9] : memref<176x256xf32, #tpu.memory_space<vmem>>, vector<160x256xf32>
    %c7_i32_10 = arith.constant 7 : i32
    %19 = vector.broadcast %c7_i32_10 : i32 to vector<160x1xi32>
    %20 = arith.cmpi eq, %8, %19 : vector<160x1xi32>
    %cst_11 = arith.constant 0.000000e+00 : f32
    %21 = vector.shape_cast %20 : vector<160x1xi1> to vector<160x1xi1>
    %22 = vector.broadcast %21 : vector<160x1xi1> to vector<160x256xi1>
    %23 = vector.broadcast %cst_11 : f32 to vector<160x256xf32>
    %24 = arith.select %22, %23, %18 : vector<160x256xi1>, vector<160x256xf32>
    %25 = arith.truncf %24 : vector<160x256xf32> to vector<160x256xbf16>
    %c0_12 = arith.constant 0 : index
    %c0_13 = arith.constant 0 : index
    %26 = vector.load %arg7[%c0_12, %c0_13] : memref<160x256xbf16, #tpu.memory_space<vmem>>, vector<160x256xbf16>
    tpu.vector_store %arg7[%c0_12, %c0_13], %25 {strides = array<i32>} : memref<160x256xbf16, #tpu.memory_space<vmem>>, vector<160x256xbf16>,
    %c0_14 = arith.constant 0 : index
    %c0_15 = arith.constant 0 : index
    %27 = vector.load %arg3[%c0_14, %c0_15] : memref<1x128xf32, #tpu.memory_space<vmem>>, vector<1x128xf32>
    %28 = vector.shape_cast %27 : vector<1x128xf32> to vector<1x128xf32>
    %29 = vector.broadcast %28 : vector<1x128xf32> to vector<128x128xf32>
    %c0_16 = arith.constant 0 : index
    %c0_17 = arith.constant 0 : index
    %30 = vector.load %arg6[%c0_16, %c0_17] : memref<160x256xbf16, #tpu.memory_space<vmem>>, vector<128x256xbf16>
    %c8 = arith.constant 8 : index
    %c0_18 = arith.constant 0 : index
    %31 = vector.load %arg5[%c8, %c0_18] : memref<176x256xf32, #tpu.memory_space<vmem>>, vector<128x256xf32>
    %32 = arith.truncf %31 : vector<128x256xf32> to vector<128x256xbf16>
    %c0_19 = arith.constant 0 : index
    %c0_20 = arith.constant 0 : index
    %33 = vector.load %arg7[%c0_19, %c0_20] : memref<160x256xbf16, #tpu.memory_space<vmem>>, vector<128x256xbf16>
    %c0_21 = arith.constant 0 : index
    %c0_22 = arith.constant 0 : index
    %34 = vector.load %arg2[%c0_21, %c0_22] : memref<2304x128xbf16, #tpu.memory_space<vmem>>, vector<256x128xbf16>
    %cst_23 = arith.constant dense<0.000000e+00> : vector<128x128xf32>
    %35 = tpu.matmul %30, %34, %cst_23 {dimension_numbers = #tpu.dot_dimension_numbers<[1], [0], [0], [1], [0, 0, 1, 1], [], []>} : vector<128x256xbf16>, vector<256x128xbf16>, vector<128x128xf32> -> vector<128x128xf32>
    %36 = arith.addf %29, %35 : vector<128x128xf32>
    %c256 = arith.constant 256 : index
    %c0_24 = arith.constant 0 : index
    %37 = vector.load %arg2[%c256, %c0_24] : memref<2304x128xbf16, #tpu.memory_space<vmem>>, vector<256x128xbf16>
    %cst_25 = arith.constant dense<0.000000e+00> : vector<128x128xf32>
    %38 = tpu.matmul %32, %37, %cst_25 {dimension_numbers = #tpu.dot_dimension_numbers<[1], [0], [0], [1], [0, 0, 1, 1], [], []>} : vector<128x256xbf16>, vector<256x128xbf16>, vector<128x128xf32> -> vector<128x128xf32>
    %39 = arith.addf %36, %38 : vector<128x128xf32>
    %c512 = arith.constant 512 : index
    %c0_26 = arith.constant 0 : index
    %40 = vector.load %arg2[%c512, %c0_26] : memref<2304x128xbf16, #tpu.memory_space<vmem>>, vector<256x128xbf16>
    %cst_27 = arith.constant dense<0.000000e+00> : vector<128x128xf32>
    %41 = tpu.matmul %33, %40, %cst_27 {dimension_numbers = #tpu.dot_dimension_numbers<[1], [0], [0], [1], [0, 0, 1, 1], [], []>} : vector<128x256xbf16>, vector<256x128xbf16>, vector<128x128xf32> -> vector<128x128xf32>
    %42 = arith.addf %39, %41 : vector<128x128xf32>
    %c16 = arith.constant 16 : index
    %c0_28 = arith.constant 0 : index
    %43 = vector.load %arg6[%c16, %c0_28] : memref<160x256xbf16, #tpu.memory_space<vmem>>, vector<128x256xbf16>
    %c24_29 = arith.constant 24 : index
    %c0_30 = arith.constant 0 : index
    %44 = vector.load %arg5[%c24_29, %c0_30] : memref<176x256xf32, #tpu.memory_space<vmem>>, vector<128x256xf32>
    %45 = arith.truncf %44 : vector<128x256xf32> to vector<128x256xbf16>
    %c16_31 = arith.constant 16 : index
    %c0_32 = arith.constant 0 : index
    %46 = vector.load %arg7[%c16_31, %c0_32] : memref<160x256xbf16, #tpu.memory_space<vmem>>, vector<128x256xbf16>
    %c768 = arith.constant 768 : index
    %c0_33 = arith.constant 0 : index
    %47 = vector.load %arg2[%c768, %c0_33] : memref<2304x128xbf16, #tpu.memory_space<vmem>>, vector<256x128xbf16>
    %cst_34 = arith.constant dense<0.000000e+00> : vector<128x128xf32>
    %48 = tpu.matmul %43, %47, %cst_34 {dimension_numbers = #tpu.dot_dimension_numbers<[1], [0], [0], [1], [0, 0, 1, 1], [], []>} : vector<128x256xbf16>, vector<256x128xbf16>, vector<128x128xf32> -> vector<128x128xf32>
    %49 = arith.addf %42, %48 : vector<128x128xf32>
    %c1024 = arith.constant 1024 : index
    %c0_35 = arith.constant 0 : index
    %50 = vector.load %arg2[%c1024, %c0_35] : memref<2304x128xbf16, #tpu.memory_space<vmem>>, vector<256x128xbf16>
    %cst_36 = arith.constant dense<0.000000e+00> : vector<128x128xf32>
    %51 = tpu.matmul %45, %50, %cst_36 {dimension_numbers = #tpu.dot_dimension_numbers<[1], [0], [0], [1], [0, 0, 1, 1], [], []>} : vector<128x256xbf16>, vector<256x128xbf16>, vector<128x128xf32> -> vector<128x128xf32>
    %52 = arith.addf %49, %51 : vector<128x128xf32>
    %c1280 = arith.constant 1280 : index
    %c0_37 = arith.constant 0 : index
    %53 = vector.load %arg2[%c1280, %c0_37] : memref<2304x128xbf16, #tpu.memory_space<vmem>>, vector<256x128xbf16>
    %cst_38 = arith.constant dense<0.000000e+00> : vector<128x128xf32>
    %54 = tpu.matmul %46, %53, %cst_38 {dimension_numbers = #tpu.dot_dimension_numbers<[1], [0], [0], [1], [0, 0, 1, 1], [], []>} : vector<128x256xbf16>, vector<256x128xbf16>, vector<128x128xf32> -> vector<128x128xf32>
    %55 = arith.addf %52, %54 : vector<128x128xf32>
    %c32 = arith.constant 32 : index
    %c0_39 = arith.constant 0 : index
    %56 = vector.load %arg6[%c32, %c0_39] : memref<160x256xbf16, #tpu.memory_space<vmem>>, vector<128x256xbf16>
    %c40 = arith.constant 40 : index
    %c0_40 = arith.constant 0 : index
    %57 = vector.load %arg5[%c40, %c0_40] : memref<176x256xf32, #tpu.memory_space<vmem>>, vector<128x256xf32>
    %58 = arith.truncf %57 : vector<128x256xf32> to vector<128x256xbf16>
    %c32_41 = arith.constant 32 : index
    %c0_42 = arith.constant 0 : index
    %59 = vector.load %arg7[%c32_41, %c0_42] : memref<160x256xbf16, #tpu.memory_space<vmem>>, vector<128x256xbf16>
    %c1536 = arith.constant 1536 : index
    %c0_43 = arith.constant 0 : index
    %60 = vector.load %arg2[%c1536, %c0_43] : memref<2304x128xbf16, #tpu.memory_space<vmem>>, vector<256x128xbf16>
    %cst_44 = arith.constant dense<0.000000e+00> : vector<128x128xf32>
    %61 = tpu.matmul %56, %60, %cst_44 {dimension_numbers = #tpu.dot_dimension_numbers<[1], [0], [0], [1], [0, 0, 1, 1], [], []>} : vector<128x256xbf16>, vector<256x128xbf16>, vector<128x128xf32> -> vector<128x128xf32>
    %62 = arith.addf %55, %61 : vector<128x128xf32>
    %c1792 = arith.constant 1792 : index
    %c0_45 = arith.constant 0 : index
    %63 = vector.load %arg2[%c1792, %c0_45] : memref<2304x128xbf16, #tpu.memory_space<vmem>>, vector<256x128xbf16>
    %cst_46 = arith.constant dense<0.000000e+00> : vector<128x128xf32>
    %64 = tpu.matmul %58, %63, %cst_46 {dimension_numbers = #tpu.dot_dimension_numbers<[1], [0], [0], [1], [0, 0, 1, 1], [], []>} : vector<128x256xbf16>, vector<256x128xbf16>, vector<128x128xf32> -> vector<128x128xf32>
    %65 = arith.addf %62, %64 : vector<128x128xf32>
    %c2048 = arith.constant 2048 : index
    %c0_47 = arith.constant 0 : index
    %66 = vector.load %arg2[%c2048, %c0_47] : memref<2304x128xbf16, #tpu.memory_space<vmem>>, vector<256x128xbf16>
    %cst_48 = arith.constant dense<0.000000e+00> : vector<128x128xf32>
    %67 = tpu.matmul %59, %66, %cst_48 {dimension_numbers = #tpu.dot_dimension_numbers<[1], [0], [0], [1], [0, 0, 1, 1], [], []>} : vector<128x256xbf16>, vector<256x128xbf16>, vector<128x128xf32> -> vector<128x128xf32>
    %68 = arith.addf %65, %67 : vector<128x128xf32>
    %c0_49 = arith.constant 0 : index
    %c0_50 = arith.constant 0 : index
    %69 = vector.load %arg4[%c0_49, %c0_50] : memref<128x128xf32, #tpu.memory_space<vmem>>, vector<128x128xf32>
    tpu.vector_store %arg4[%c0_49, %c0_50], %68 {strides = array<i32>} : memref<128x128xf32, #tpu.memory_space<vmem>>, vector<128x128xf32>,
    return
  }
  func.func @transform_0(%arg0: i32) -> (i32, i32) {
    %c0_i32 = arith.constant 0 : i32
    %c0_i32_0 = arith.constant 0 : i32
    %c0_i32_1 = arith.constant 0 : i32
    return %c0_i32, %c0_i32_0 : i32, i32
  }
  func.func @transform_1(%arg0: i32) -> (i32, i32) {
    %c0_i32 = arith.constant 0 : i32
    %c0_i32_0 = arith.constant 0 : i32
    %c0_i32_1 = arith.constant 0 : i32
    return %c0_i32, %c0_i32_0 : i32, i32
  }
  func.func @transform_2(%arg0: i32) -> (i32, i32) {
    %c0_i32 = arith.constant 0 : i32
    %c0_i32_0 = arith.constant 0 : i32
    %c0_i32_1 = arith.constant 0 : i32
    return %c0_i32, %c0_i32_0 : i32, i32
  }
  func.func @transform_3(%arg0: i32) -> (i32, i32) {
    %c0_i32 = arith.constant 0 : i32
    %c0_i32_0 = arith.constant 0 : i32
    %c0_i32_1 = arith.constant 0 : i32
    return %c0_i32, %c0_i32_0 : i32, i32
  }
}

</mosaic_0001>

<bundles_post_ra>
// kernel: conv2d_3x3_pallas.1
= control target key start
LH: loop header
LB: loop body
LE: loop exit
PB: predicated region body
PF: predicated region fallthrough
CT: control target
= control target key end

     0   :  { %8 = vsyncpa [#allocation6], 0  ;;  %s4735_s12 = smov [#allocation5]   ;;  %s6287_s0 = inlined_call_operand.vmem [shape: bf16[128,256], index: 0, kind: input, shape index: {}]   ;;  %s6288_s1 = inlined_call_operand.hbm [shape: bf16[2304,128], index: 1, kind: input, shape index: {}]   ;;  %s6289_s2 = inlined_call_operand.vmem [shape: f32[1,128], index: 2, kind: input, shape index: {}]   ;;  %s6290_s3 = inlined_call_operand.vmem [shape: f32[128,128], index: 3, kind: output, shape index: {}]  }
   0x1   :  { %s16_s13 = sshll.u32 %s4735_s12, 4  ;;  %s4711_s16 = scalar_lea.hbm %s6288_s1, 18432  ;;  %s17_s13 = int_to_ptr.vmem [resolvable:$true] %s16_s13 }
   0x2   :  { %p4712_p0 = scmp.ne.s32.totalorder %s6288_s1, %s4711_s16  ;;  %p4715_p1 = scmp.lt.u32.totalorder %s4711_s16, %s6288_s1 }
   0x4   :  { %p4717_p2 = pnand %p4715_p1, %p4712_p0 }
   0x6   :  { %4720 = shalt.err (!%p4717_p2)
}
   0x7   :  { %s4721_s21 = scalar_lea.vmem %s17_s13, 18432  ;;  %p4726_p4 = scmp.lt.s32.totalorder %s17_s13, %s17_s13 }
   0x8   :  { %p4722_p3 = scmp.ne.s32.totalorder %s17_s13, %s4721_s21  ;;  %p4727_p5 = scmp.lt.s32.totalorder %s4721_s21, %s4721_s21 }
   0xa   :  { %p4728_p6 = por %p4727_p5, %p4726_p4 }
   0xc   :  { %p4729_p7 = pnand %p4728_p6, %p4722_p3 }
   0xe   :  { %4732 = shalt.err (!%p4729_p7)
}
   0xf   :  { %s4736_s22 = smov 64   ;;  %s4737_s23 = smov 4  }
  0x10   :  { %22 = dma.hbm_to_vmem [thread:$0]  %s6288_s1, 18432, %s17_s13, [#allocation6], %s4736_s22, %s4736_s22, %s4737_s23  }
  0x11   :  { %4733 = dma.done.wait [#allocation6], 18432  }
  0x12   :  { %4734 = vsyncadd [#allocation6], 4294948864  ;;  %v121_v0 = vlaneseq  ;;  %v4738_v1 = vmov 0.0   ;;  %v4554_v7 = vld [vmem:[#allocation5 + $0x40] sm:$0xff]   ;;  %v4556_v10 = vld [vmem:[#allocation5 + $0x48] sm:$0xff]   ;;  %vm6337_vm0 = vcmask 1040384  }
  0x13   :  { %30 = vst [vmem:[#allocation2 + $0x8] sm:$0xff] %v4738_v1  ;;  %32 = vst [vmem:[#allocation2 + $0x18] sm:$0xff] %v4738_v1  ;;  %v4555_v9 = vld [vmem:[#allocation5] sm:$0xff]   ;;  %3918 = vmatprep.subr.bf16.mxu0 %v4554_v7  ;;  %4494 = vmatprep.subr.bf16.mxu1 %v4554_v7  ;;  %v4557_v11 = vld [vmem:[#allocation5 + $0x8] sm:$0xff]   ;;  %v4802_v19 = vrot.slane %v4738_v1, 7  ;;  %v6364_v58 = vmov 0 }
  0x14   :  { %29 = vst [vmem:[#allocation2] sm:$0xff] %v4738_v1  ;;  %31 = vst [vmem:[#allocation2 + $0x10] sm:$0xff] %v4738_v1  ;;  %v4780_v2 = vshrl.u32 %v121_v0, 7  ;;  %3919 = vmatpush3.bf16.msra.mxu0 %v4555_v9  ;;  %4502 = vmatpush3.bf16.msra.mxu1 %v4555_v9  ;;  %v4558_v13 = vld [vmem:[#allocation5 + $0x50] sm:$0xff]   ;;  %v4560_v18 = vld [vmem:[#allocation5 + $0x58] sm:$0xff]  }
  0x15   :  { %117 = vst [vmem:[#allocation2 + $0x140] sm:$0xff] %v4738_v1  ;;  %118 = vst [vmem:[#allocation2 + $0x148] sm:$0xff] %v4738_v1  ;;  %3920 = vmatprep.subr.bf16.mxu0 %v4556_v10  ;;  %4495 = vmatprep.subr.bf16.mxu1 %v4556_v10  ;;  %v4559_v17 = vld [vmem:[#allocation5 + $0x10] sm:$0xff]   ;;  %v4561_v22 = vld [vmem:[#allocation5 + $0x18] sm:$0xff]  }
  0x16   :  { %119 = vst [vmem:[#allocation2 + $0x150] sm:$0xff] %v4738_v1  ;;  %120 = vst [vmem:[#allocation2 + $0x158] sm:$0xff] %v4738_v1  ;;  %v4783_v3 = vadd.s32 8, %v4780_v2  ;;  %v6301_v4 = vand.u32 7, %v4780_v2  ;;  %v4788_v6 = vadd.s32 64, %v4780_v2  ;;  %v4791_v8 = vadd.s32 72, %v4780_v2 }
  0x17   :  { %v4796_v15 = vadd.s32 16, %v4780_v2  ;;  %v4799_v16 = vadd.s32 24, %v4780_v2  ;;  %v4805_v20 = vadd.s32 80, %v4780_v2  ;;  %v4808_v21 = vadd.s32 88, %v4780_v2  ;;  %v4562_v24 = vld [vmem:[#allocation5 + $0x60] sm:$0xff]   ;;  %v4564_v29 = vld [vmem:[#allocation5 + $0x68] sm:$0xff]  }
  0x18   :  { %v6302_v5 = vand.u32 7, %v4783_v3  ;;  %v6291_v12 = vand.u32 7, %v4788_v6  ;;  %v6292_v14 = vand.u32 7, %v4791_v8  ;;  %3921 = vmatpush3.bf16.msra.mxu0 %v4557_v11  ;;  %4503 = vmatpush3.bf16.msra.mxu1 %v4557_v11  ;;  %vm4814_vm1 = vcmp.ne.s32.totalorder %v6301_v4, 0  ;;  %v4563_v28 = vld [vmem:[#allocation5 + $0x20] sm:$0xff]   ;;  %v40_v31 = vld [vmem:[%s6287_s0 + $0x28] sm:$0xff] }
  0x19   :  { %3922 = vmatprep.subr.bf16.mxu0 %v4558_v13  ;;  %4496 = vmatprep.subr.bf16.mxu1 %v4558_v13  ;;  %v6297_v23 = vand.u32 7, %v4796_v15  ;;  %v6299_v25 = vand.u32 7, %v4799_v16  ;;  %v41_v34 = vld [vmem:[%s6287_s0 + $0x30] sm:$0xff]  ;;  %v42_v35 = vld [vmem:[%s6287_s0 + $0x38] sm:$0xff]  ;;  %v61_v36 = vunpack.c.l.bf16 %v40_v31  ;;  %v62_v37 = vunpack.c.h.bf16 %v40_v31  ;;  %v4565_v44 = vld [vmem:[#allocation5 + $0x28] sm:$0xff]  }
  0x1a   :  { %vm4820_vm2 = vcmp.ne.s32.totalorder %v6302_v5, 0  ;;  %v163_v30 = vld [vmem:[#allocation2 + $0x8] sm:$0x80]  ;;  %vm4829_vm3 = vcmp.ne.s32.totalorder %v6292_v14, 0  ;;  %vm4841_vm4 = vcmp.ne.s32.totalorder %v6291_v12, 0  ;;  %v63_v39 = vunpack.c.l.bf16 %v41_v34  ;;  %v4566_v49 = vld [vmem:[#allocation5 + $0x70] sm:$0xff]  }
  0x1b   :  { %v310_v33 = vrot.slane %v163_v30, 7  ;;  %v64_v40 = vunpack.c.h.bf16 %v41_v34  ;;  %v65_v41 = vunpack.c.l.bf16 %v42_v35  ;;  %v66_v42 = vunpack.c.h.bf16 %v42_v35  ;;  %v162_v43 = vld [vmem:[#allocation2] sm:$0x80]  ;;  %vm3440_vm5 = vmpackc.low %vm4820_vm2, %vm4814_vm1  ;;  %94 = vst [vmem:[#allocation2 + $0x88] sm:$0xff] %v62_v37  ;;  %v4567_v54 = vld [vmem:[#allocation5 + $0x30] sm:$0xff]  }
  0x1c   :  { %3923 = vmatpush3.bf16.msra.mxu0 %v4559_v17  ;;  %4504 = vmatpush3.bf16.msra.mxu1 %v4559_v17  ;;  %v4851_v46 = vrot.slane %v62_v37, 7  ;;  %93 = vst [vmem:[#allocation2 + $0x80] sm:$0xff] %v61_v36  ;;  %v307_v47 = vrot.slane %v162_v43, 7  ;;  %v4853_v48 = vrot.slane %v61_v36, 7  ;;  %95 = vst [vmem:[#allocation2 + $0x90] sm:$0xff] %v63_v39  ;;  %v341_v53 = vrot.slane %v63_v39, 7 }
  0x1d   :  { %3924 = vmatprep.subr.bf16.mxu0 %v4560_v18  ;;  %4497 = vmatprep.subr.bf16.mxu1 %v4560_v18  ;;  %v312_v45 = vsel %vm6337_vm0, %v310_v33, %v4802_v19  ;;  %96 = vst [vmem:[#allocation2 + $0x98] sm:$0xff] %v64_v40  ;;  %98 = vst [vmem:[#allocation2 + $0xa8] sm:$0xff] %v66_v42  ;;  %v343_v51 = vrot.slane %v64_v40, 7  ;;  %v4856_v52 = vrot.slane %v66_v42, 7  ;;  %v4858_v55 = vrot.slane %v65_v41, 7  ;;  %v4568_v60 = vld [vmem:[#allocation5 + $0x78] sm:$0xff]  }
  0x1e   :  { %v3441_v50 = vpack.c.bf16 %v4802_v19, %v312_v45  ;;  %97 = vst [vmem:[#allocation2 + $0xa0] sm:$0xff] %v65_v41  ;;  %vm4873_vm6 = vmpackc.low %vm4829_vm3, %vm4841_vm4  ;;  %v6293_v59 = vand.u32 7, %v4805_v20  ;;  %v4882_v62 = vsel %vm6337_vm0, %v307_v47, %v4802_v19  ;;  %v6294_v63 = vand.u32 7, %v4808_v21  ;;  %v4569_v10 = vld [vmem:[#allocation5 + $0x38] sm:$0xff]   ;;  %v4570_v17 = vld [vmem:[#allocation5 + $0xc0] sm:$0xff]  }
  0x1f   :  { %v344_v56 = vsel %vm6337_vm0, %v4851_v46, %v343_v51  ;;  %v348_v57 = vsel %vm6337_vm0, %v343_v51, %v4856_v52  ;;  %v6365_v58 = vsel %vm4873_vm6, 4294967295, %v6364_v58  ;;  %v342_v0 = vsel %vm6337_vm0, %v4853_v48, %v341_v53  ;;  %v4571_v31 = vld [vmem:[#allocation5 + $0x140] sm:$0xff]   ;;  %v44_v34 = vld [vmem:[%s6287_s0 + $0x48] sm:$0xff] }
  0x20   :  { %3925 = vmatpush3.bf16.msra.mxu0 %v4561_v22  ;;  %4505 = vmatpush3.bf16.msra.mxu1 %v4561_v22  ;;  %6366 = vst [vmem:[#allocation8_spill] sm:$0xff] %v6365_v58  ;;  %v4878_v61 = vpack.c.bf16 %v348_v57, %v344_v56  ;;  %v346_v7 = vsel %vm6337_vm0, %v341_v53, %v4858_v55  ;;  %vm4891_vm7 = vcmp.ne.s32.totalorder %v6299_v25, 0  ;;  %vm4900_vm8 = vcmp.ne.s32.totalorder %v6297_v23, 0  ;;  %v35_v22 = vld [vmem:[%s6287_s0] sm:$0xff]  ;;  %v4577_v9 = vld [vmem:[#allocation5 + $0x108] sm:$0xff]  }
  0x21   :  { %3926 = vmatprep.subr.bf16.mxu0 %v4562_v24  ;;  %4498 = vmatprep.subr.bf16.mxu1 %v4562_v24  ;;  %v3446_v13 = vpack.c.bf16 %v4802_v19, %v4882_v62  ;;  %v4906_v18 = vpack.c.bf16 %v346_v7, %v342_v0  ;;  %v36_v24 = vld [vmem:[%s6287_s0 + $0x8] sm:$0xff]  ;;  %vm4919_vm9 = vcmp.ne.s32.totalorder %v6294_v63, 0  ;;  %vm4925_vm10 = vcmp.ne.s32.totalorder %v6293_v59, 0  ;;  %v4572_v37 = vld [vmem:[#allocation5 + $0x80] sm:$0xff]   ;;  %vm4960_vm11 = vmpackc.low %vm4891_vm7, %vm4900_vm8 }
  0x22   :  { %3442 = vmatprep.mubr.msk.bf16.mxu0 %vm3440_vm5, %v3441_v50  ;;  %6367 = vst [vmem:[#allocation9_spill] sm:$0xff] %v4878_v61  ;;  %3482 = vmatprep.mubr.msk.bf16.mxu1 %vm4873_vm6, %v4878_v61  ;;  %v4929_v32 = vunpack.c.h.bf16 %v35_v22  ;;  %v4931_v33 = vunpack.c.h.bf16 %v36_v24  ;;  %v4938_v36 = vunpack.c.l.bf16 %v35_v22  ;;  %v4573_v38 = vld [vmem:[#allocation5 + $0x100] sm:$0xff]   ;;  %v4940_v39 = vunpack.c.h.bf16 %v44_v34  ;;  %v4575_v50 = vld [vmem:[#allocation5 + $0x148] sm:$0xff]   ;;  %vm5001_vm12 = vmpackc.low %vm4919_vm9, %vm4925_vm10 }
  0x23   :  { %6372 = vst [vmem:[#allocation10_spill] sm:$0xff] %v4906_v18  ;;  %v4942_v40 = vunpack.c.l.bf16 %v36_v24  ;;  %v4946_v42 = vunpack.c.l.bf16 %v44_v34  ;;  %v4576_v7 = vld [vmem:[#allocation5 + $0x88] sm:$0xff]   ;;  %v4987_v22 = vrot.slane %v4738_v1, 1  ;;  %v5013_v27 = vadd.s32 32, %v4780_v2  ;;  %v4578_v24 = vld [vmem:[#allocation5 + $0xd0] sm:$0xff]   ;;  %v4585_v59 = vld [vmem:[#allocation5 + $0x118] sm:$0xff]  }
  0x24   :  { %3927 = vmatpush3.bf16.msra.mxu0 %v4563_v28  ;;  %4506 = vmatpush3.bf16.msra.mxu1 %v4563_v28  ;;  %v43_v28 = vld [vmem:[%s6287_s0 + $0x40] sm:$0xff]  ;;  %84 = vst [vmem:[#allocation2 + $0x38] sm:$0xff] %v4929_v32  ;;  %86 = vst [vmem:[#allocation2 + $0x48] sm:$0xff] %v4931_v33  ;;  %v319_v43 = vrot.slane %v4929_v32, 7  ;;  %v317_v47 = vrot.slane %v4938_v36, 7  ;;  %v355_v53 = vrot.slane %v4940_v39, 7 }
  0x25   :  { %3928 = vmatprep.subr.bf16.mxu0 %v4564_v29  ;;  %4499 = vmatprep.subr.bf16.mxu1 %v4564_v29  ;;  %v4936_v35 = vunpack.c.h.bf16 %v43_v28  ;;  %v4944_v41 = vunpack.c.l.bf16 %v43_v28  ;;  %83 = vst [vmem:[#allocation2 + $0x30] sm:$0xff] %v4938_v36  ;;  %102 = vst [vmem:[#allocation2 + $0xc8] sm:$0xff] %v4940_v39  ;;  %v353_v57 = vrot.slane %v4946_v42, 7  ;;  %v5019_v28 = vadd.s32 40, %v4780_v2  ;;  %v4579_v29 = vld [vmem:[#allocation5 + $0x150] sm:$0xff]   ;;  %v39_v4 = vld [vmem:[%s6287_s0 + $0x20] sm:$0xff] }
  0x26   :  { %85 = vst [vmem:[#allocation2 + $0x40] sm:$0xff] %v4942_v40  ;;  %101 = vst [vmem:[#allocation2 + $0xc0] sm:$0xff] %v4946_v42  ;;  %v6295_v30 = vand.u32 7, %v5013_v27  ;;  %v4580_v34 = vld [vmem:[#allocation5 + $0x90] sm:$0xff]   ;;  %v5162_v5 = vadd.s32 56, %v4780_v2  ;;  %vm6338_vm4 = vcmask 1046528  }
  0x27   :  { %100 = vst [vmem:[#allocation2 + $0xb8] sm:$0xff] %v4936_v35  ;;  %v351_v45 = vrot.slane %v4936_v35, 7  ;;  %99 = vst [vmem:[#allocation2 + $0xb0] sm:$0xff] %v4944_v41  ;;  %v349_v56 = vrot.slane %v4944_v41, 7  ;;  %v662_v61 = vrot.slane %v4929_v32, 1 }
  0x28   :  { %3929 = vmatpush3.bf16.msra.mxu0 %v4565_v44  ;;  %4507 = vmatpush3.bf16.msra.mxu1 %v4565_v44  ;;  %v323_v44 = vrot.slane %v4931_v33, 7  ;;  %vm5046_vm13 = vcmp.ne.s32.totalorder %v6295_v30, 0 }
  0x29   :  { %3930 = vmatprep.subr.bf16.mxu0 %v4566_v49  ;;  %4500 = vmatprep.subr.bf16.mxu1 %v4566_v49  ;;  %v4574_v49 = vld [vmem:[#allocation5 + $0xc8] sm:$0xff]   ;;  %v352_v0 = vsel %vm6337_vm0, %v4856_v52, %v351_v45  ;;  %v356_v11 = vsel %vm6337_vm0, %v351_v45, %v355_v53  ;;  %v6379_v52 = vmov 0  ;;  %v350_v26 = vsel %vm6337_vm0, %v4858_v55, %v349_v56 }
  0x2a   :  { %v324_v62 = vsel %vm6337_vm0, %v319_v43, %v323_v44  ;;  %v6380_v52 = vsel %vm5001_vm12, 4294967295, %v6379_v52  ;;  %v5005_v1 = vpack.c.bf16 %v356_v11, %v352_v0  ;;  %v5037_v45 = vadd.s32 96, %v4780_v2  ;;  %v4583_v0 = vld [vmem:[#allocation5 + $0x158] sm:$0xff]  }
  0x2b   :  { %6381 = vst [vmem:[#allocation11_spill] sm:$0xff] %v6380_v52  ;;  %v663_v32 = vsel %vm6338_vm4, %v4987_v22, %v662_v61 }
  0x2c   :  { %3931 = vmatpush3.bf16.msra.mxu0 %v4567_v54  ;;  %4508 = vmatpush3.bf16.msra.mxu1 %v4567_v54  ;;  %v321_v54 = vrot.slane %v4942_v40, 7  ;;  %6382 = vst [vmem:[#allocation12_spill] sm:$0xff] %v5005_v1  ;;  %v6298_v14 = vand.u32 7, %v5037_v45 }
  0x2d   :  { %3932 = vmatprep.subr.bf16.mxu0 %v4568_v60  ;;  %4501 = vmatprep.subr.bf16.mxu1 %v4568_v60  ;;  %v320_v60 = vsel %vm6337_vm0, %v4802_v19, %v319_v43  ;;  %v6296_v43 = vand.u32 7, %v5019_v28 }
  0x2e   :  { %vm5107_vm1 = vcmp.ne.s32.totalorder %v6298_v14, 0 }
  0x2f   :  { %vm5060_vm14 = vcmp.ne.s32.totalorder %v6296_v43, 0 }
  0x30   :  { %3933 = vmatpush3.bf16.msra.mxu0 %v4569_v10  ;;  %4509 = vmatpush3.bf16.msra.mxu1 %v4569_v10  ;;  %v4979_v10 = vpack.c.bf16 %v324_v62, %v320_v60  ;;  %v45_v60 = vld [vmem:[%s6287_s0 + $0x50] sm:$0xff]  ;;  %v46_v62 = vld [vmem:[%s6287_s0 + $0x58] sm:$0xff]  ;;  %vm5101_vm15 = vmpackc.low %vm5060_vm14, %vm5046_vm13 }
  0x31   :  { %3982 = vmatprep.subr.bf16.mxu1 %v4570_v17  ;;  %4046 = vmatprep.subr.bf16.mxu0 %v4571_v31  ;;  %v318_v17 = vsel %vm6337_vm0, %v4802_v19, %v317_v47  ;;  %v322_v19 = vsel %vm6337_vm0, %v317_v47, %v321_v54  ;;  %v4582_v47 = vld [vmem:[#allocation5 + $0xd8] sm:$0xff]  }
  0x32   :  { %v5028_v55 = vpack.c.bf16 %v322_v19, %v318_v17 }
  0x33   :  { %3447 = vmatmul.mubr.msk.bf16.vlgmr.msra.gmra.mrb[0].mxu0 %vm3440_vm5, %v3446_v13  ;;  %3487 = vmatmul.mubr.msk.bf16.vlgmr.msra.gmra.mrb[0].mxu1 %vm4873_vm6, %v4906_v18  ;;  %v354_v13 = vsel %vm6337_vm0, %v349_v56, %v353_v57  ;;  %v4598_v18 = vld [vmem:[#allocation5 + $0xf8] sm:$0xff]  }
  0x34   :  { %3983 = vmatpush3.bf16.msra.mxu1 %v4572_v37  ;;  %4047 = vmatpush3.bf16.msra.mxu0 %v4573_v38  ;;  %v5030_v31 = vpack.c.bf16 %v354_v13, %v350_v26  ;;  %v4581_v37 = vld [vmem:[#allocation5 + $0x110] sm:$0xff]   ;;  %v5066_v26 = vunpack.c.h.bf16 %v45_v60  ;;  %v5068_v13 = vunpack.c.h.bf16 %v46_v62 }
  0x35   :  { %3984 = vmatprep.subr.bf16.mxu1 %v4574_v49  ;;  %4048 = vmatprep.subr.bf16.mxu0 %v4575_v50  ;;  %v37_v38 = vld [vmem:[%s6287_s0 + $0x10] sm:$0xff]  ;;  %v38_v49 = vld [vmem:[%s6287_s0 + $0x18] sm:$0xff] }
  0x36   :  { %3452 = vmatprep.mubr.msk.bf16.mxu0 %vm4960_vm11, %v4979_v10  ;;  %3492 = vmatprep.mubr.msk.bf16.mxu1 %vm5001_vm12, %v5005_v1  ;;  %6383 = vst [vmem:[#allocation13_spill] sm:$0xff] %v5030_v31  ;;  %v5042_v50 = vunpack.c.h.bf16 %v37_v38  ;;  %v5056_v11 = vunpack.c.h.bf16 %v38_v49  ;;  %104 = vst [vmem:[#allocation2 + $0xd8] sm:$0xff] %v5066_v26  ;;  %v6304_v30 = vrot.slane %v5068_v13, 7  ;;  %v4694_v1 = vld [vmem:[#allocation5 + $0x3e0] sm:$0xff]  }
  0x37   :  { %106 = vst [vmem:[#allocation2 + $0xe8] sm:$0xff] %v5068_v13 }
  0x38   :  { %3985 = vmatpush3.bf16.msra.mxu1 %v4576_v7  ;;  %4049 = vmatpush3.bf16.msra.mxu0 %v4577_v9  ;;  %88 = vst [vmem:[#allocation2 + $0x58] sm:$0xff] %v5042_v50  ;;  %v327_v19 = vrot.slane %v5042_v50, 7  ;;  %v5071_v7 = vadd.s32 104, %v4780_v2  ;;  %v4584_v9 = vld [vmem:[#allocation5 + $0x98] sm:$0xff]   ;;  %90 = vst [vmem:[#allocation2 + $0x68] sm:$0xff] %v5056_v11  ;;  %v6305_v12 = vrot.slane %v5056_v11, 7 }
  0x39   :  { %3986 = vmatprep.subr.bf16.mxu1 %v4578_v24  ;;  %4050 = vmatprep.subr.bf16.mxu0 %v4579_v29  ;;  %v5076_v24 = vunpack.c.l.bf16 %v37_v38  ;;  %v5078_v29 = vunpack.c.l.bf16 %v38_v49  ;;  %v359_v49 = vrot.slane %v5066_v26, 7 }
  0x3a   :  { %v328_v63 = vsel %vm6337_vm0, %v323_v44, %v327_v19  ;;  %v6300_v38 = vand.u32 7, %v5071_v7  ;;  %v332_v43 = vsel %vm6337_vm0, %v327_v19, %v6305_v12  ;;  %v4587_v19 = vld [vmem:[#allocation5 + $0x160] sm:$0xff]   ;;  %v48_v12 = vld [vmem:[%s6287_s0 + $0x68] sm:$0xff]  ;;  %v4686_v44 = vld [vmem:[#allocation5 + $0x3d0] sm:$0xff]  }
  0x3b   :  { %3457 = vmatmul.mubr.msk.bf16.gmra.mrb[4].mxu0 %vm4960_vm11, %v5028_v55  ;;  %3497 = vmatmul.mubr.msk.bf16.gmra.mrb[4].mxu1 %vm5001_vm12, %v5030_v31  ;;  %87 = vst [vmem:[#allocation2 + $0x50] sm:$0xff] %v5076_v24  ;;  %89 = vst [vmem:[#allocation2 + $0x60] sm:$0xff] %v5078_v29  ;;  %v360_v56 = vsel %vm6337_vm0, %v355_v53, %v359_v49  ;;  %v364_v17 = vsel %vm6337_vm0, %v359_v49, %v6304_v30  ;;  %v325_v25 = vrot.slane %v5076_v24, 7  ;;  %v4589_v49 = vld [vmem:[#allocation5 + $0x120] sm:$0xff]   ;;  %v4594_v31 = vld [vmem:[#allocation5 + $0xf0] sm:$0xff]  }
  0x3c   :  { %3987 = vmatpush3.bf16.msra.mxu1 %v4580_v34  ;;  %4051 = vmatpush3.bf16.msra.mxu0 %v4581_v37  ;;  %v4586_v34 = vld [vmem:[#allocation5 + $0xe0] sm:$0xff]   ;;  %v5113_v37 = vpack.c.bf16 %v332_v43, %v328_v63  ;;  %vm4522_vm2 = vcmp.ne.s32.totalorder %v6300_v38, 0  ;;  %v5123_v14 = vpack.c.bf16 %v364_v17, %v360_v56  ;;  %v6393_v63 = vmov 0  ;;  %v4590_v56 = vld [vmem:[#allocation5 + $0xe8] sm:$0xff]  }
  0x3d   :  { %3988 = vmatprep.subr.bf16.mxu1 %v4582_v47  ;;  %4052 = vmatprep.subr.bf16.mxu0 %v4583_v0  ;;  %v4588_v47 = vld [vmem:[#allocation5 + $0xa0] sm:$0xff]   ;;  %vm5131_vm3 = vmpackc.low %vm4522_vm2, %vm5107_vm1  ;;  %v6303_v53 = vrot.slane %v5078_v29, 7  ;;  %v5136_v43 = vunpack.c.l.bf16 %v45_v60  ;;  %v5138_v0 = vunpack.c.l.bf16 %v46_v62  ;;  %v5141_v17 = vadd.s32 48, %v4780_v2  ;;  %v4591_v38 = vld [vmem:[#allocation5 + $0x168] sm:$0xff]  }
  0x3e   :  { %6392 = vst [vmem:[#allocation14_spill] sm:$0xff] %v5123_v14  ;;  %3462 = vmatprep.mubr.msk.bf16.mxu0 %vm5101_vm15, %v5113_v37  ;;  %v6394_v63 = vsel %vm5131_vm3, 4294967295, %v6393_v63  ;;  %v326_v23 = vsel %vm6337_vm0, %v321_v54, %v325_v25  ;;  %3502 = vmatprep.mubr.msk.bf16.mxu1 %vm5131_vm3, %v5123_v14  ;;  %v4592_v54 = vld [vmem:[#allocation5 + $0xa8] sm:$0xff]   ;;  %v5169_v30 = vadd.s32 112, %v4780_v2  ;;  %v5194_v52 = vunpack.c.h.bf16 %v48_v12 }
  0x3f   :  { %6395 = vst [vmem:[#allocation15_spill] sm:$0xff] %v6394_v63  ;;  %v330_v60 = vsel %vm6337_vm0, %v325_v25, %v6303_v53  ;;  %103 = vst [vmem:[#allocation2 + $0xd0] sm:$0xff] %v5136_v43  ;;  %v357_v62 = vrot.slane %v5136_v43, 7  ;;  %v47_v53 = vld [vmem:[%s6287_s0 + $0x60] sm:$0xff]  ;;  %v5244_v58 = vunpack.c.l.bf16 %v48_v12  ;;  %v4600_v12 = vld [vmem:[#allocation5 + $0xb8] sm:$0xff]  }
  0x40   :  { %3989 = vmatpush3.bf16.msra.mxu1 %v4584_v9  ;;  %4053 = vmatpush3.bf16.msra.mxu0 %v4585_v59  ;;  %105 = vst [vmem:[#allocation2 + $0xe0] sm:$0xff] %v5138_v0  ;;  %v6310_v59 = vrot.slane %v5138_v0, 7  ;;  %v5156_v9 = vpack.c.bf16 %v330_v60, %v326_v23  ;;  %v4593_v23 = vld [vmem:[#allocation5 + $0x128] sm:$0xff]   ;;  %v5177_v60 = vunpack.c.h.bf16 %v39_v4  ;;  %v5182_v25 = vunpack.c.h.bf16 %v47_v53  ;;  %110 = vst [vmem:[#allocation2 + $0x108] sm:$0xff] %v5194_v52 }
  0x41   :  { %3990 = vmatprep.subr.bf16.mxu1 %v4586_v34  ;;  %4054 = vmatprep.subr.bf16.mxu0 %v4587_v19  ;;  %v358_v34 = vsel %vm6337_vm0, %v353_v57, %v357_v62  ;;  %v6317_v57 = vand.u32 7, %v5162_v5  ;;  %v6327_v63 = vrot.slane %v5194_v52, 7  ;;  %109 = vst [vmem:[#allocation2 + $0x100] sm:$0xff] %v5244_v58 }
  0x42   :  { %6396 = vst [vmem:[#allocation16_spill] sm:$0xff] %v5156_v9  ;;  %v362_v19 = vsel %vm6337_vm0, %v357_v62, %v6310_v59  ;;  %92 = vst [vmem:[#allocation2 + $0x78] sm:$0xff] %v5177_v60  ;;  %v335_v62 = vrot.slane %v5177_v60, 7  ;;  %v6398_v59 = vand.u32 7, %v5141_v17 }
  0x43   :  { %3467 = vmatmul.mubr.msk.bf16.gmra.mrb[8].mxu0 %vm5101_vm15, %v5156_v9  ;;  %v5187_v14 = vpack.c.bf16 %v362_v19, %v358_v34  ;;  %108 = vst [vmem:[#allocation2 + $0xf8] sm:$0xff] %v5182_v25  ;;  %v5198_v34 = vadd.s32 120, %v4780_v2  ;;  %vm4516_vm7 = vcmp.ne.s32.totalorder %v6317_v57, 0  ;;  %v4596_v57 = vld [vmem:[#allocation5 + $0xb0] sm:$0xff]  }
  0x44   :  { %3991 = vmatpush3.bf16.msra.mxu1 %v4588_v47  ;;  %4055 = vmatpush3.bf16.msra.mxu0 %v4589_v49  ;;  %vm4517_vm5 = vcmp.ne.s32.totalorder %v6398_v59, 0  ;;  %v4595_v47 = vld [vmem:[#allocation5 + $0x170] sm:$0xff]   ;;  %v340_v19 = vsel %vm6337_vm0, %v335_v62, %v4851_v46  ;;  %v6403_v46 = vrot.slane %v5068_v13, 7 }
  0x45   :  { %6397 = vst [vmem:[#allocation17_spill] sm:$0xff] %v5187_v14  ;;  %3992 = vmatprep.subr.bf16.mxu1 %v4590_v56  ;;  %3507 = vmatmul.mubr.msk.bf16.gmra.mrb[8].mxu1 %vm5131_vm3, %v5187_v14  ;;  %v6399_v56 = vrot.slane %v5056_v11, 7  ;;  %vm5211_vm8 = vmpackc.low %vm4516_vm7, %vm4517_vm5  ;;  %v367_v14 = vrot.slane %v5182_v25, 7 }
  0x46   :  { %4056 = vmatprep.subr.bf16.mxu0 %v4591_v38  ;;  %v6322_v38 = vand.u32 7, %v5198_v34 }
  0x47   :  { %v336_v59 = vsel %vm6337_vm0, %v6399_v56, %v335_v62  ;;  %v4597_v56 = vld [vmem:[#allocation5 + $0x130] sm:$0xff]   ;;  %v368_v62 = vsel %vm6337_vm0, %v6403_v46, %v367_v14  ;;  %v4599_v46 = vld [vmem:[#allocation5 + $0x178] sm:$0xff]  }
  0x48   :  { %3993 = vmatpush3.bf16.msra.mxu1 %v4592_v54  ;;  %v5218_v49 = vpack.c.bf16 %v340_v19, %v336_v59  ;;  %4057 = vmatpush3.bf16.msra.mxu0 %v4593_v23  ;;  %vm4524_vm9 = vcmp.ne.s32.totalorder %v6322_v38, 0  ;;  %v372_v54 = vsel %vm6337_vm0, %v367_v14, %v6327_v63  ;;  %v6404_v59 = vand.u32 7, %v5169_v30  ;;  %v4601_v63 = vld [vmem:[#allocation5 + $0x138] sm:$0xff]  }
  0x49   :  { %3994 = vmatprep.subr.bf16.mxu1 %v4594_v31  ;;  %v5234_v23 = vunpack.c.l.bf16 %v39_v4  ;;  %v5236_v19 = vunpack.c.l.bf16 %v47_v53  ;;  %4058 = vmatprep.subr.bf16.mxu0 %v4595_v47  ;;  %v5242_v38 = vpack.c.bf16 %v372_v54, %v368_v62  ;;  %v6408_v14 = vand.u32 7, %v4783_v3  ;;  %v510_v3 = vld [vmem:[#allocation2 + $0x18] sm:$0xfe] }
  0x4a   :  { %6402 = vst [vmem:[#allocation18_spill] sm:$0xff] %v5218_v49  ;;  %3472 = vmatprep.mubr.msk.bf16.mxu0 %vm5211_vm8, %v5218_v49  ;;  %vm4525_vm10 = vcmp.ne.s32.totalorder %v6404_v59, 0  ;;  %v6411_v47 = vrot.slane %v5078_v29, 7  ;;  %v6412_v54 = vrot.slane %v5138_v0, 7  ;;  %v509_v49 = vld [vmem:[#allocation2 + $0x10] sm:$0xfe] }
  0x4b   :  { %vm5238_vm13 = vmpackc.low %vm4524_vm9, %vm4525_vm10  ;;  %6407 = vst [vmem:[#allocation19_spill] sm:$0xff] %v5242_v38  ;;  %vm5249_vm14 = vcmp.ne.s32.totalorder %v6408_v14, 7  ;;  %v333_v4 = vrot.slane %v5234_v23, 7  ;;  %v365_v53 = vrot.slane %v5236_v19, 7  ;;  %v6424_v59 = vand.u32 7, %v5013_v27 }
  0x4c   :  { %91 = vst [vmem:[#allocation2 + $0x70] sm:$0xff] %v5234_v23  ;;  %107 = vst [vmem:[#allocation2 + $0xf0] sm:$0xff] %v5236_v19  ;;  %3995 = vmatpush3.bf16.msra.mxu1 %v4596_v57  ;;  %3512 = vmatprep.mubr.msk.bf16.mxu1 %vm5238_vm13, %v5242_v38  ;;  %v4607_v27 = vld [vmem:[%s6287_s0] ss:$8 sps:$4 sm:$0xff]  }
  0x4d   :  { %4059 = vmatpush3.bf16.msra.mxu0 %v4597_v56  ;;  %v334_v62 = vsel %vm6337_vm0, %v6411_v47, %v333_v4  ;;  %v338_v57 = vsel %vm6337_vm0, %v333_v4, %v4853_v48  ;;  %v366_v14 = vsel %vm6337_vm0, %v6412_v54, %v365_v53  ;;  %3996 = vmatprep.subr.bf16.mxu1 %v4598_v18  ;;  %v6413_v56 = vand.u32 7, %v4780_v2 }
  0x4e   :  { %4060 = vmatprep.subr.bf16.mxu0 %v4599_v46  ;;  %v5278_v9 = vpack.c.bf16 %v338_v57, %v334_v62  ;;  %v6416_v47 = vrot.slane %v5244_v58, 7  ;;  %v657_v4 = vrot.slane %v510_v3, 1  ;;  %v654_v18 = vrot.slane %v509_v49, 1  ;;  %v4604_v62 = vld [vmem:[#allocation5 + $0x240] sm:$0xff]  }
  0x4f   :  { %vm5274_vm1 = vcmp.ne.s32.totalorder %v6413_v56, 7  ;;  %v660_v54 = vrot.slane %v4938_v36, 1  ;;  %v4602_v56 = vld [vmem:[#allocation5 + $0x1c0] sm:$0xff]   ;;  %v666_v3 = vrot.slane %v4931_v33, 1  ;;  %v670_v57 = vrot.slane %v5042_v50, 1 }
  0x50   :  { %v370_v48 = vsel %vm6337_vm0, %v365_v53, %v6416_v47  ;;  %vm3520_vm2 = vmpackc.low %vm5249_vm14, %vm5274_vm1  ;;  %3997 = vmatpush3.bf16.msra.mxu1 %v4600_v12  ;;  %3477 = vmatmul.mubr.msk.bf16.gmra.mrb[12].mxu0 %vm5211_vm8, %v5278_v9  ;;  %v659_v53 = vsel %vm6338_vm4, %v657_v4, %v4987_v22  ;;  %v656_v12 = vsel %vm6338_vm4, %v654_v18, %v4987_v22  ;;  %v4605_v33 = vld [vmem:[#allocation5 + $0x200] sm:$0xff]   ;;  %v664_v18 = vrot.slane %v4942_v40, 1  ;;  %v4610_v40 = vld [vmem:[#allocation5 + $0x248] sm:$0xff]  }
  0x51   :  { %v5287_v46 = vpack.c.bf16 %v370_v48, %v366_v14  ;;  %4061 = vmatpush3.bf16.msra.mxu0 %v4601_v63  ;;  %v3521_v49 = vpack.c.bf16 %v663_v32, %v659_v53  ;;  %v661_v36 = vsel %vm6338_vm4, %v4987_v22, %v660_v54  ;;  %v4739_v14 = vmov 0.0|0.0   ;;  %4110 = vmatprep.subr.bf16.mxu1 %v4602_v56  ;;  %v4603_v47 = vld [vmem:[#allocation5 + $0x180] sm:$0xff]  }
  0x52   :  { %4174 = vmatprep.subr.bf16.mxu0 %v4604_v62  ;;  %v6417_v63 = vand.u32 7, %v4799_v16  ;;  %v6418_v32 = vand.u32 7, %v4796_v15  ;;  %v3526_v22 = vpack.c.bf16 %v661_v36, %v656_v12  ;;  %v4606_v50 = vld [vmem:[%s6287_s0 + $0x4] ss:$8 sps:$4 sm:$0xff]   ;;  %v667_v48 = vsel %vm6338_vm4, %v662_v61, %v666_v3  ;;  %v4618_v62 = vld [vmem:[#allocation5 + $0x1d8] sm:$0xff]  }
  0x53   :  { %3517 = vmatmul.mubr.msk.bf16.gmra.mrb[12].mxu1 %vm5238_vm13, %v5287_v46  ;;  %3522 = vmatprep.mubr.msk.bf16.mxu0 %vm3520_vm2, %v3521_v49  ;;  %v671_v4 = vsel %vm6338_vm4, %v666_v3, %v670_v57  ;;  %v668_v56 = vrot.slane %v5076_v24, 1  ;;  %v674_v16 = vrot.slane %v5056_v11, 1  ;;  %v678_v53 = vrot.slane %v5177_v60, 1  ;;  %v4608_v12 = vld [vmem:[#allocation5 + $0x1c8] sm:$0xff]  }
  0x54   :  { %1344 = vmatprep.mubr.bf16.mxu1 %v4739_v14  ;;  %vm4528_vm5 = vcmp.ne.s32.totalorder %v6417_v63, 7  ;;  %vm4529_vm7 = vcmp.ne.s32.totalorder %v6418_v32, 7  ;;  %v6419_v15 = vmov 0  ;;  %v5326_v49 = vpack.c.bf16 %v671_v4, %v667_v48  ;;  %v4609_v61 = vld [vmem:[#allocation5 + $0x188] sm:$0xff]   ;;  %v4616_v32 = vld [vmem:[#allocation5 + $0x250] sm:$0xff]  }
  0x55   :  { %vm5322_vm9 = vmpackc.low %vm4528_vm5, %vm4529_vm7  ;;  %v4611_v24 = vld [vmem:[#allocation5 + $0x208] sm:$0xff]   ;;  %v665_v11 = vsel %vm6338_vm4, %v660_v54, %v664_v18  ;;  %v669_v3 = vsel %vm6338_vm4, %v664_v18, %v668_v56  ;;  %v6421_v36 = vand.u32 7, %v5019_v28  ;;  %vm5343_vm5 = vcmp.ne.s32.totalorder %v6424_v59, 7  ;;  %v5410_v28 = vld [vmem:[#allocation2 + $0x90] sm:$0xff] }
  0x56   :  { %v6420_v15 = vsel %vm5322_vm9, 4294967295, %v6419_v15  ;;  %v679_v54 = vsel %vm6338_vm4, %v674_v16, %v678_v53  ;;  %v6427_v63 = vand.u32 7, %v5162_v5  ;;  %v5367_v5 = vpack.c.bf16 %v669_v3, %v665_v11 }
  0x57   :  { %vm5337_vm10 = vcmp.ne.s32.totalorder %v6421_v36, 7  ;;  %v672_v4 = vrot.slane %v5078_v29, 1  ;;  %v676_v18 = vrot.slane %v5234_v23, 1  ;;  %v5395_v29 = vld [vmem:[#allocation2 + $0x80] sm:$0xff] }
  0x58   :  { %3527 = vmatmul.mubr.msk.bf16.vlgmr.msra.gmra.mrb[16].mxu0 %vm3520_vm2, %v3526_v22  ;;  %vm5351_vm14 = vcmp.ne.s32.totalorder %v6427_v63, 7  ;;  %vm5376_vm2 = vmpackc.low %vm5337_vm10, %vm5343_vm5  ;;  %v700_v22 = vrot.slane %v5136_v43, 1  ;;  %v712_v43 = vrot.slane %v5244_v58, 1 }
  0x59   :  { %4175 = vmatpush3.bf16.msra.mxu0 %v4605_v33  ;;  %v4614_v33 = vld [vmem:[#allocation5 + $0x1d0] sm:$0xff]   ;;  %3532 = vmatprep.mubr.msk.bf16.mxu0 %vm5322_vm9, %v5326_v49  ;;  %v673_v59 = vsel %vm6338_vm4, %v668_v56, %v672_v4  ;;  %v677_v38 = vsel %vm6338_vm4, %v672_v4, %v676_v18  ;;  %v6438_v4 = vand.u32 7, %v4808_v21 }
  0x5a   :  { %4176 = vmatprep.subr.bf16.mxu0 %v4610_v40  ;;  %v5384_v40 = vld [vmem:[#allocation2 + $0x98] sm:$0xff] }
  0x5b   :  { %1345 = vmatmul.mubr.bf16.vlgmr.msra.gmra.mrb[16].mxu1 %v4739_v14  ;;  %v675_v14 = vsel %vm6338_vm4, %v670_v57, %v674_v16  ;;  %v6430_v57 = vand.u32 7, %v5141_v17  ;;  %v894_v17 = vld [vmem:[#allocation2 + $0x88] sm:$0xff]  ;;  %v4615_v16 = vld [vmem:[#allocation5 + $0x190] sm:$0xff]   ;;  %v686_v3 = vrot.slane %v5384_v40, 1  ;;  %vm5419_vm10 = vcmp.ne.s32.totalorder %v6438_v4, 7 }
  0x5c   :  { %4111 = vmatpush3.bf16.msra.mxu1 %v4603_v47  ;;  %1352 = vmatprep.mubr.bf16.mxu1 %v4606_v50  ;;  %v4612_v47 = vld [vmem:[%s6287_s0 + $0x14] ss:$8 sps:$4 sm:$0xff]   ;;  %v6433_v50 = vmov 0  ;;  %v5380_v48 = vpack.c.bf16 %v679_v54, %v675_v14  ;;  %v682_v11 = vrot.slane %v894_v17, 1  ;;  %v680_v14 = vrot.slane %v5395_v29, 1 }
  0x5d   :  { %4112 = vmatprep.subr.bf16.mxu1 %v4608_v12  ;;  %vm5363_vm1 = vcmp.ne.s32.totalorder %v6430_v57, 7  ;;  %v6434_v50 = vsel %vm5376_vm2, 4294967295, %v6433_v50  ;;  %4177 = vmatpush3.bf16.msra.mxu0 %v4611_v24  ;;  %v4617_v12 = vld [vmem:[#allocation5 + $0x210] sm:$0xff]   ;;  %v6436_v24 = vmov 0  ;;  %v4620_v54 = vld [vmem:[#allocation5 + $0x258] sm:$0xff]   ;;  %v696_v57 = vrot.slane %v4946_v42, 1 }
  0x5e   :  { %6435 = vst [vmem:[#allocation20_spill] sm:$0xff] %v5380_v48  ;;  %4178 = vmatprep.subr.bf16.mxu0 %v4616_v32  ;;  %vm5391_vm7 = vmpackc.low %vm5351_vm14, %vm5363_vm1  ;;  %v687_v63 = vsel %vm6338_vm4, %v682_v11, %v686_v3  ;;  %v4621_v32 = vld [vmem:[#allocation5 + $0x218] sm:$0xff]   ;;  %v6441_v42 = vand.u32 7, %v4805_v20  ;;  %v5443_v20 = vpack.c.bf16 %v894_v17, %v5177_v60  ;;  %v5462_v60 = vld [vmem:[#allocation2 + $0xa0] sm:$0xff]  ;;  %v681_v36 = vsel %vm6338_vm4, %v676_v18, %v680_v14 }
  0x5f   :  { %v6437_v24 = vsel %vm5391_vm7, 4294967295, %v6436_v24  ;;  %v4613_v56 = vld [vmem:[%s6287_s0 + $0x10] ss:$8 sps:$4 sm:$0xff]   ;;  %v701_v21 = vsel %vm6338_vm4, %v696_v57, %v700_v22  ;;  %v4629_v18 = vld [vmem:[#allocation5 + $0x1a8] sm:$0xff]   ;;  %v5529_v17 = vadd.s32 128, %v4780_v2 }
  0x60   :  { %4113 = vmatpush3.bf16.msra.mxu1 %v4609_v61  ;;  %v6334_v61 = vrot.slane %v4944_v41, 1  ;;  %3537 = vmatmul.mubr.msk.bf16.gmra.mrb[20].mxu0 %vm5322_vm9, %v5367_v5  ;;  %vm5427_vm5 = vcmp.ne.s32.totalorder %v6441_v42, 7  ;;  %v4624_v42 = vld [vmem:[#allocation5 + $0x260] sm:$0xff]  }
  0x61   :  { %4114 = vmatprep.subr.bf16.mxu1 %v4614_v33  ;;  %3542 = vmatprep.mubr.msk.bf16.mxu0 %vm5376_vm2, %v5380_v48  ;;  %v683_v33 = vsel %vm6338_vm4, %v678_v53, %v682_v11  ;;  %v4622_v11 = vld [vmem:[#allocation5 + $0x1e0] sm:$0xff]   ;;  %vm5455_vm1 = vmpackc.low %vm5419_vm10, %vm5427_vm5 }
  0x62   :  { %4179 = vmatpush3.bf16.msra.mxu0 %v4617_v12  ;;  %v697_v12 = vsel %vm6338_vm4, %v6334_v61, %v696_v57  ;;  %v6444_v61 = vand.u32 7, %v4791_v8  ;;  %v6449_v8 = vand.u32 7, %v5071_v7 }
  0x63   :  { %1353 = vmatmul.mubr.bf16.gmra.mrb[20].mxu1 %v4607_v27  ;;  %v4619_v27 = vld [vmem:[#allocation5 + $0x198] sm:$0xff]   ;;  %4180 = vmatprep.subr.bf16.mxu0 %v4620_v54  ;;  %v5440_v54 = vpack.c.bf16 %v701_v21, %v697_v12  ;;  %v688_v12 = vrot.slane %v5462_v60, 1  ;;  %v698_v21 = vrot.slane %v4940_v39, 1 }
  0x64   :  { %1360 = vmatprep.mubr.bf16.mxu1 %v4612_v47  ;;  %4115 = vmatpush3.bf16.msra.mxu1 %v4615_v16  ;;  %v898_v47 = vld [vmem:[#allocation2 + $0xa8] sm:$0xff]  ;;  %v5423_v16 = vpack.c.bf16 %v677_v38, %v673_v59  ;;  %v684_v59 = vrot.slane %v5410_v28, 1  ;;  %v4623_v38 = vld [vmem:[#allocation5 + $0x1a0] sm:$0xff]   ;;  %vm5447_vm14 = vcmp.ne.s32.totalorder %v6444_v61, 7  ;;  %vm5466_vm0 = vcmp.ne.s32.totalorder %v6449_v8, 7 }
  0x65   :  { %4116 = vmatprep.subr.bf16.mxu1 %v4618_v62  ;;  %v5437_v62 = vpack.c.bf16 %v687_v63, %v683_v33  ;;  %v690_v4 = vrot.slane %v898_v47, 1  ;;  %v4625_v33 = vld [vmem:[#allocation5 + $0x220] sm:$0xff]   ;;  %v6464_v8 = vand.u32 7, %v5169_v30  ;;  %v5526_v48 = vpack.c.bf16 %v898_v47, %v5384_v40  ;;  %v4636_v40 = vld [vmem:[#allocation5 + $0x270] sm:$0xff]  }
  0x66   :  { %4181 = vmatpush3.bf16.msra.mxu0 %v4621_v32  ;;  %v685_v61 = vsel %vm6338_vm4, %v680_v14, %v684_v59  ;;  %v6452_v32 = vand.u32 7, %v5037_v45  ;;  %v4630_v45 = vld [vmem:[#allocation5 + $0x268] sm:$0xff]   ;;  %v6347_v47 = vand.u32 7, %v5529_v17 }
  0x67   :  { %4182 = vmatprep.subr.bf16.mxu0 %v4624_v42  ;;  %v691_v7 = vsel %vm6338_vm4, %v686_v3, %v690_v4  ;;  %v5488_v14 = vpack.c.bf16 %v685_v61, %v681_v36  ;;  %v702_v3 = vrot.slane %v5066_v26, 1  ;;  %v4631_v42 = vld [vmem:[#allocation5 + $0x228] sm:$0xff]   ;;  %v6461_v26 = vand.u32 7, %v5198_v34  ;;  %v4635_v34 = vld [vmem:[#allocation5 + $0x1b0] sm:$0xff]  }
  0x68   :  { %4117 = vmatpush3.bf16.msra.mxu1 %v4619_v27  ;;  %3547 = vmatmul.mubr.msk.bf16.gmra.mrb[24].mxu0 %vm5376_vm2, %v5423_v16  ;;  %v4628_v27 = vld [vmem:[#allocation5 + $0x1e8] sm:$0xff]   ;;  %vm5477_vm10 = vcmp.ne.s32.totalorder %v6452_v32, 7  ;;  %v5532_v36 = vadd.s32 136, %v4780_v2  ;;  %v6470_v32 = vrot.slane %v4944_v41, 1  ;;  %v6473_v41 = vmov 0 }
  0x69   :  { %4118 = vmatprep.subr.bf16.mxu1 %v4622_v11  ;;  %3552 = vmatprep.mubr.msk.bf16.mxu0 %vm5391_vm7, %v5437_v62  ;;  %v6456_v11 = vand.u32 7, %v4788_v6  ;;  %vm5515_vm9 = vcmp.ne.s32.totalorder %v6461_v26, 7  ;;  %v4642_v26 = vld [vmem:[#allocation5 + $0x278] sm:$0xff]  }
  0x6a   :  { %4183 = vmatpush3.bf16.msra.mxu0 %v4625_v33  ;;  %v5577_v33 = vpack.c.bf16 %v5462_v60, %v5410_v28  ;;  %v6475_v28 = vrot.slane %v5194_v52, 7 }
  0x6b   :  { %1361 = vmatmul.mubr.bf16.gmra.mrb[24].mxu1 %v4613_v56  ;;  %v6455_v56 = vrot.slane %v4936_v35, 1  ;;  %vm4535_vm5 = vcmp.ne.s32.totalorder %v6456_v11, 7  ;;  %4184 = vmatprep.subr.bf16.mxu0 %v4630_v45 }
  0x6c   :  { %1368 = vmatprep.mubr.bf16.mxu1 %v5443_v20  ;;  %4119 = vmatpush3.bf16.msra.mxu1 %v4623_v38  ;;  %v5503_v38 = vpack.c.bf16 %v5395_v29, %v5234_v23  ;;  %vm5507_vm2 = vmpackc.low %vm5447_vm14, %vm4535_vm5  ;;  %v4634_v29 = vld [vmem:[#allocation5 + $0x1f0] sm:$0xff]   ;;  %vm6468_vm14 = vcmask 1046528   ;;  %v710_v23 = vrot.slane %v5182_v25, 1 }
  0x6d   :  { %v695_v53 = vsel %vm6338_vm4, %v690_v4, %v6455_v56  ;;  %4120 = vmatprep.subr.bf16.mxu1 %v4628_v27  ;;  %vm5497_vm4 = vmpackc.low %vm5466_vm0, %vm5477_vm10  ;;  %vm5521_vm0 = vcmp.ne.s32.totalorder %v6464_v8, 7  ;;  %v6467_v30 = vmov %v6455_v56  ;;  %v49_v56 = vld [vmem:[%s6287_s0 + $0x70] sm:$0xff] }
  0x6e   :  { %v5511_v39 = vpack.c.bf16 %v695_v53, %v691_v7  ;;  %4185 = vmatpush3.bf16.msra.mxu0 %v4631_v42  ;;  %v699_v61 = vsel %vm6468_vm14, %v6467_v30, %v698_v21  ;;  %vm6469_vm10 = vmmov %vm6468_vm14  ;;  %v4637_v7 = vld [vmem:[#allocation5 + $0x230] sm:$0xff]   ;;  %v6348_v53 = vand.u32 7, %v5532_v36  ;;  %v5555_v11 = vunpack.c.h.bf16 %v49_v56  ;;  %v4641_v42 = vld [vmem:[#allocation5 + $0x1b8] sm:$0xff]  }
  0x6f   :  { %v689_v27 = vsel %vm6469_vm10, %v684_v59, %v688_v12  ;;  %vm6471_vm5 = vmmov %vm6469_vm10  ;;  %v5565_v59 = vunpack.c.l.bf16 %v49_v56  ;;  %4186 = vmatprep.subr.bf16.mxu0 %v4636_v40  ;;  %v4646_v40 = vld [vmem:[#allocation5 + $0x340] sm:$0xff]  }
  0x70   :  { %4121 = vmatpush3.bf16.msra.mxu1 %v4629_v18  ;;  %3557 = vmatmul.mubr.msk.bf16.gmra.mrb[28].mxu0 %vm5391_vm7, %v5488_v14  ;;  %v693_v57 = vsel %vm6471_vm5, %v688_v12, %v6470_v32  ;;  %vm6472_vm7 = vmmov %vm6471_vm5  ;;  %v4640_v18 = vld [vmem:[#allocation5 + $0x1f8] sm:$0xff]   ;;  %v4626_v12 = vld [vmem:[%s6287_s0 + $0x44] ss:$8 sps:$4 sm:$0xff]   ;;  %112 = vst [vmem:[#allocation2 + $0x118] sm:$0xff] %v5555_v11 }
  0x71   :  { %4122 = vmatprep.subr.bf16.mxu1 %v4634_v29  ;;  %3562 = vmatprep.mubr.msk.bf16.mxu0 %vm5507_vm2, %v5511_v39  ;;  %v703_v35 = vsel %vm6472_vm7, %v698_v21, %v702_v3  ;;  %vm5561_vm14 = vmpackc.low %vm5515_vm9, %vm5521_vm0  ;;  %v5567_v45 = vpack.c.bf16 %v693_v57, %v689_v27  ;;  %v706_v21 = vrot.slane %v5068_v13, 1  ;;  %111 = vst [vmem:[#allocation2 + $0x110] sm:$0xff] %v5565_v59  ;;  %v4643_v29 = vld [vmem:[#allocation5 + $0x238] sm:$0xff]   ;;  %v375_v13 = vrot.slane %v5555_v11, 7  ;;  %v4627_v57 = vld [vmem:[%s6287_s0 + $0x40] ss:$8 sps:$4 sm:$0xff]  }
  0x72   :  { %v6474_v41 = vsel %vm5561_vm14, 4294967295, %v6473_v41  ;;  %4187 = vmatpush3.bf16.msra.mxu0 %v4637_v7  ;;  %v5579_v8 = vpack.c.bf16 %v703_v35, %v699_v61  ;;  %vm6476_vm9 = vcmask 1040384   ;;  %v373_v30 = vrot.slane %v5565_v59, 7  ;;  %vm6477_vm7 = vmmov %vm6471_vm5  ;;  %v4632_v7 = vld [vmem:[%s6287_s0 + $0x54] ss:$8 sps:$4 sm:$0xff]  }
  0x73   :  { %1369 = vmatmul.mubr.bf16.gmra.mrb[28].mxu1 %v5503_v38  ;;  %4188 = vmatprep.subr.bf16.mxu0 %v4642_v26  ;;  %v5591_v60 = vsel %vm6476_vm9, %v6475_v28, %v375_v13  ;;  %v707_v25 = vsel %vm6477_vm7, %v702_v3, %v706_v21  ;;  %vm6478_vm0 = vmmov %vm6471_vm5  ;;  %v6479_v27 = vrot.slane %v5244_v58, 7  ;;  %v704_v35 = vrot.slane %v5138_v0, 1  ;;  %v1683_v28 = vld [vmem:[#allocation2 + $0x38] sm:$0xff] }
  0x74   :  { %1376 = vmatprep.mubr.bf16.mxu1 %v5526_v48  ;;  %4123 = vmatpush3.bf16.msra.mxu1 %v4635_v34  ;;  %v4644_v34 = vld [vmem:[#allocation5 + $0x2c0] sm:$0xff]   ;;  %v711_v61 = vsel %vm6478_vm0, %v706_v21, %v710_v23  ;;  %vm6480_vm10 = vmmov %vm6476_vm9  ;;  %v708_v3 = vrot.slane %v5236_v19, 1 }
  0x75   :  { %4124 = vmatprep.subr.bf16.mxu1 %v4640_v18  ;;  %v5605_v32 = vsel %vm6480_vm10, %v6479_v27, %v373_v30  ;;  %v5615_v56 = vpack.c.bf16 %v711_v61, %v707_v25  ;;  %v714_v18 = vrot.slane %v5194_v52, 1  ;;  %vm6481_vm5 = vmmov %vm6478_vm0  ;;  %v1685_v25 = vld [vmem:[#allocation2 + $0x48] sm:$0xff]  ;;  %v5656_v61 = vadd.s32 144, %v4780_v2 }
  0x76   :  { %4189 = vmatpush3.bf16.msra.mxu0 %v4643_v29  ;;  %v705_v0 = vsel %vm6481_vm5, %v700_v22, %v704_v35  ;;  %vm6482_vm9 = vmmov %vm6478_vm0  ;;  %v716_v22 = vrot.slane %v5565_v59, 1  ;;  %v4663_v59 = vld [vmem:[#allocation5 + $0x320] sm:$0xff]  }
  0x77   :  { %4302 = vmatprep.subr.bf16.mxu0 %v4646_v40  ;;  %v709_v19 = vsel %vm6482_vm9, %v704_v35, %v708_v3  ;;  %vm6483_vm7 = vmmov %vm6478_vm0  ;;  %v5659_v40 = vadd.s32 152, %v4780_v2  ;;  %v1715_v35 = vpack.c.bf16 %v1685_v25, %v1683_v28  ;;  %v1684_v2 = vld [vmem:[#allocation2 + $0x40] sm:$0xff]  ;;  %vm4542_vm9 = vcmp.ne.s32.totalorder %v6348_v53, 0  ;;  %v4650_v28 = vld [vmem:[#allocation5 + $0x348] sm:$0xff]  }
  0x78   :  { %4125 = vmatpush3.bf16.msra.mxu1 %v4641_v42  ;;  %3567 = vmatmul.mubr.msk.bf16.gmra.mrb[32].mxu0 %vm5507_vm2, %v5567_v45  ;;  %v715_v52 = vsel %vm6483_vm7, %v710_v23, %v714_v18  ;;  %v4633_v42 = vld [vmem:[%s6287_s0 + $0x50] ss:$8 sps:$4 sm:$0xff]   ;;  %v5636_v26 = vpack.c.bf16 %v709_v19, %v705_v0  ;;  %v4638_v23 = vld [vmem:[%s6287_s0 + $0x64] ss:$8 sps:$4 sm:$0xff]   ;;  %vm6484_vm10 = vmmov %vm6478_vm0  ;;  %vm4543_vm7 = vcmp.ne.s32.totalorder %v6347_v47, 0 }
  0x79   :  { %3572 = vmatprep.mubr.msk.bf16.mxu0 %vm5455_vm1, %v5579_v8  ;;  %4238 = vmatprep.subr.bf16.mxu1 %v4644_v34  ;;  %v713_v34 = vsel %vm6484_vm10, %v708_v3, %v712_v43  ;;  %vm6485_vm5 = vmmov %vm6478_vm0  ;;  %v1687_v19 = vld [vmem:[#allocation2 + $0x58] sm:$0xff]  ;;  %v1702_v53 = vld [vmem:[#allocation2 + $0xd0] sm:$0xff] }
  0x7a   :  { %v717_v58 = vsel %vm6485_vm5, %v712_v43, %v716_v22  ;;  %v50_v25 = vld [vmem:[%s6287_s0 + $0x78] sm:$0xff] }
  0x7b   :  { %1377 = vmatmul.mubr.bf16.gmra.mrb[32].mxu1 %v5577_v33  ;;  %v5661_v27 = vpack.c.bf16 %v717_v58, %v713_v34  ;;  %v1688_v34 = vld [vmem:[#allocation2 + $0x60] sm:$0xff]  ;;  %v4648_v58 = vld [vmem:[#allocation5 + $0x2c8] sm:$0xff]   ;;  %v5695_v51 = vunpack.c.l.bf16 %v50_v25  ;;  %v1703_v47 = vld [vmem:[#allocation2 + $0xd8] sm:$0xff] }
  0x7c   :  { %1384 = vmatprep.mubr.bf16.mxu1 %v4626_v12  ;;  %v718_v12 = vrot.slane %v5555_v11, 1 }
  0x7e   :  { %v719_v21 = vsel %vm6478_vm0, %v714_v18, %v718_v12  ;;  %v1682_v18 = vld [vmem:[#allocation2 + $0x30] sm:$0xff]  ;;  %vm5686_vm0 = vmpackc.low %vm4542_vm9, %vm4543_vm7 }
  0x7f   :  { %v5638_v29 = vpack.c.bf16 %v719_v21, %v715_v52  ;;  %v1714_v0 = vpack.c.bf16 %v1684_v2, %v1682_v18  ;;  %v1689_v52 = vld [vmem:[#allocation2 + $0x68] sm:$0xff]  ;;  %v4647_v21 = vld [vmem:[#allocation5 + $0x300] sm:$0xff]   ;;  %v4654_v18 = vld [vmem:[#allocation5 + $0x350] sm:$0xff]   ;;  %v5693_v2 = vunpack.c.h.bf16 %v50_v25 }
  0x80   :  { %3577 = vmatmul.mubr.msk.bf16.gmra.mrb[36].mxu0 %vm5455_vm1, %v5440_v54  ;;  %v5678_v43 = vpack.c.bf16 %v1689_v52, %v1687_v19  ;;  %v4653_v19 = vld [vmem:[#allocation5 + $0x290] sm:$0xff]   ;;  %vm6491_vm9 = vmmov %vm6485_vm5 }
  0x81   :  { %3582 = vmatprep.mubr.msk.bf16.mxu0 %vm5497_vm4, %v5615_v56  ;;  %v6345_v52 = vrot.slane %v5693_v2, 7  ;;  %v4655_v25 = vld [vmem:[#allocation5 + $0x310] sm:$0xff]   ;;  %vm6493_vm7 = vmmov %vm6485_vm5 }
  0x83   :  { %1385 = vmatmul.mubr.bf16.gmra.mrb[36].mxu1 %v4627_v57  ;;  %v4639_v57 = vld [vmem:[%s6287_s0 + $0x60] ss:$8 sps:$4 sm:$0xff]  }
  0x84   :  { %1392 = vmatprep.mubr.bf16.mxu1 %v4632_v7  ;;  %v1700_v7 = vld [vmem:[#allocation2 + $0xc0] sm:$0xff] }
  0x88   :  { %3587 = vmatmul.mubr.msk.bf16.gmra.mrb[40].mxu0 %vm5497_vm4, %v5636_v26 }
  0x89   :  { %3592 = vmatprep.mubr.msk.bf16.mxu0 %vm5561_vm14, %v5638_v29 }
  0x8b   :  { %1393 = vmatmul.mubr.bf16.gmra.mrb[40].mxu1 %v4633_v42  ;;  %v4645_v42 = vld [vmem:[#allocation5 + $0x280] sm:$0xff]  }
  0x8c   :  { %1400 = vmatprep.mubr.bf16.mxu1 %v4638_v23  ;;  %v1686_v23 = vld [vmem:[#allocation2 + $0x50] sm:$0xff] }
  0x90   :  { %3597 = vmatmul.mubr.msk.bf16.gmra.mrb[44].mxu0 %vm5561_vm14, %v5661_v27  ;;  %vm6525_vm14 = vnez %v6434_v50  ;;  %v2489_v50 = vld [vmem:[#allocation2 + $0x70] sm:$0xff] }
  0x91   :  { %2147 = vmatprep.mubr.bf16.mxu0 %v1715_v35  ;;  %v4649_v35 = vld [vmem:[#allocation5 + $0x288] sm:$0xff]  }
  0x93   :  { %1401 = vmatmul.mubr.bf16.gmra.mrb[44].mxu1 %v4639_v57 }
  0x94   :  { %3602 = vmatprep.mubr.msk.bf16.mxu1 %vm4960_vm11, %v4979_v10  ;;  %v4651_v10 = vld [vmem:[#allocation5 + $0x308] sm:$0xff]  }
  0x98   :  { %2148 = vmatmul.mubr.bf16.vlgmr.msra.gmra.mrb[48].mxu0 %v1714_v0  ;;  %v5698_v0 = vpack.c.bf16 %v1688_v34, %v1686_v23 }
  0x99   :  { %4303 = vmatpush3.bf16.msra.mxu0 %v4647_v21  ;;  %2155 = vmatprep.mubr.bf16.mxu0 %v5678_v43  ;;  %v6346_v21 = vrot.slane %v5695_v51, 7 }
  0x9a   :  { %4304 = vmatprep.subr.bf16.mxu0 %v4650_v28  ;;  %v4656_v28 = vld [vmem:[#allocation5 + $0x2d8] sm:$0xff]  }
  0x9b   :  { %3607 = vmatmul.mubr.msk.bf16.vlgmr.msra.gmra.mrb[48].mxu1 %vm4960_vm11, %v5028_v55  ;;  %v4652_v55 = vld [vmem:[#allocation5 + $0x2d0] sm:$0xff]   ;;  %vm6489_vm11 = vcmask 1040384  }
  0x9c   :  { %4239 = vmatpush3.bf16.msra.mxu1 %v4645_v42  ;;  %3612 = vmatprep.mubr.msk.bf16.mxu1 %vm5101_vm15, %v5113_v37  ;;  %v5702_v42 = vld [vmem:[#allocation2 + $0x8] sm:$0xff]  ;;  %v380_v23 = vsel %vm6489_vm11, %v375_v13, %v6345_v52  ;;  %vm6490_vm10 = vmmov %vm6489_vm11  ;;  %v4658_v13 = vld [vmem:[#allocation5 + $0x358] sm:$0xff]  }
  0x9d   :  { %4240 = vmatprep.subr.bf16.mxu1 %v4648_v58  ;;  %v5705_v3 = vrot.slane %v5702_v42, 1  ;;  %4305 = vmatpush3.bf16.msra.mxu0 %v4651_v10  ;;  %v378_v34 = vsel %vm6490_vm10, %v373_v30, %v6346_v21  ;;  %v722_v58 = vrot.slane %v5693_v2, 1  ;;  %v5719_v10 = vpack.c.bf16 %v380_v23, %v5591_v60  ;;  %v4657_v60 = vld [vmem:[#allocation5 + $0x298] sm:$0xff]   ;;  %vm6494_vm11 = vmmov %vm6485_vm5  ;;  %v1701_v21 = vld [vmem:[#allocation2 + $0xc8] sm:$0xff] }
  0x9e   :  { %4306 = vmatprep.subr.bf16.mxu0 %v4654_v18  ;;  %v720_v18 = vrot.slane %v5695_v51, 1 }
  0x9f   :  { %6488 = vst [vmem:[#allocation21_spill] sm:$0xff] %v5705_v3  ;;  %v723_v52 = vsel %vm6485_vm5, %v718_v12, %v722_v58  ;;  %v727_v30 = vsel %vm6491_vm9, %v722_v58, %v5705_v3  ;;  %v6495_v12 = vld [vmem:[#allocation18_spill] sm:$0xff] }
  0xa0   :  { %4241 = vmatpush3.bf16.msra.mxu1 %v4649_v35  ;;  %v5722_v35 = vpack.c.bf16 %v378_v34, %v5605_v32  ;;  %2156 = vmatmul.mubr.bf16.gmra.mrb[52].mxu0 %v5698_v0  ;;  %v5735_v32 = vpack.c.bf16 %v727_v30, %v723_v52  ;;  %v721_v23 = vsel %vm6493_vm7, %v716_v22, %v720_v18  ;;  %v4659_v34 = vld [vmem:[#allocation5 + $0x318] sm:$0xff]   ;;  %v4662_v52 = vld [vmem:[#allocation5 + $0x360] sm:$0xff]   ;;  %v4664_v22 = vld [vmem:[#allocation5 + $0x2e8] sm:$0xff]  }
  0xa1   :  { %4242 = vmatprep.subr.bf16.mxu1 %v4652_v55  ;;  %v6492_v55 = vld [vmem:[#allocation16_spill] sm:$0xff]  ;;  %2163 = vmatprep.mubr.bf16.mxu0 %v5443_v20  ;;  %v725_v11 = vsel %vm6494_vm11, %v720_v18, %v5705_v3  ;;  %v1699_v18 = vld [vmem:[#allocation2 + $0xb8] sm:$0xff]  ;;  %v6501_v3 = vand.u32 7, %v5532_v36  ;;  %v6507_v36 = vand.u32 7, %v5656_v61 }
  0xa2   :  { %v5745_v58 = vpack.c.bf16 %v725_v11, %v721_v23  ;;  %4307 = vmatpush3.bf16.msra.mxu0 %v4655_v25  ;;  %v4660_v20 = vld [vmem:[#allocation5 + $0x2e0] sm:$0xff]   ;;  %v4665_v25 = vld [vmem:[#allocation5 + $0x2a8] sm:$0xff]   ;;  %v4670_v23 = vld [vmem:[#allocation5 + $0x370] sm:$0xff]   ;;  %v5755_v11 = vpack.c.bf16 %v1701_v21, %v1699_v18 }
  0xa3   :  { %3617 = vmatmul.mubr.msk.bf16.gmra.mrb[52].mxu1 %vm5101_vm15, %v6492_v55  ;;  %4308 = vmatprep.subr.bf16.mxu0 %v4658_v13  ;;  %v4661_v30 = vld [vmem:[#allocation5 + $0x2a0] sm:$0xff]   ;;  %v4675_v21 = vld [vmem:[#allocation5 + $0x2b8] sm:$0xff]   ;;  %vm4544_vm10 = vcmp.ne.s32.totalorder %v6501_v3, 7  ;;  %vm5786_vm7 = vcmp.ne.s32.totalorder %v6507_v36, 0  ;;  %v6508_v3 = vmov 0  ;;  %v4701_v13 = vld [vmem:[#allocation5 + $0x428] sm:$0xff]  }
  0xa4   :  { %3622 = vmatprep.mubr.msk.bf16.mxu1 %vm5211_vm8, %v6495_v12  ;;  %4243 = vmatpush3.bf16.msra.mxu1 %v4653_v19  ;;  %v4666_v19 = vld [vmem:[#allocation5 + $0x368] sm:$0xff]   ;;  %v6499_v18 = vld [vmem:[#allocation12_spill] sm:$0xff]  ;;  %v6509_v3 = vsel %vm5786_vm7, 4294967295, %v6508_v3  ;;  %v6515_v36 = vld [vmem:[#allocation19_spill] sm:$0xff]  ;;  %vm6523_vm7 = vnez %v6420_v15 }
  0xa5   :  { %4244 = vmatprep.subr.bf16.mxu1 %v4656_v28  ;;  %v6496_v28 = vld [vmem:[#allocation9_spill] sm:$0xff]  ;;  %v4687_v15 = vld [vmem:[#allocation5 + $0x390] sm:$0xff]  }
  0xa6   :  { %4309 = vmatpush3.bf16.msra.mxu0 %v4659_v34  ;;  %v4669_v34 = vld [vmem:[#allocation5 + $0x2b0] sm:$0xff]  }
  0xa7   :  { %4310 = vmatprep.subr.bf16.mxu0 %v4662_v52  ;;  %v1698_v52 = vld [vmem:[#allocation2 + $0xb0] sm:$0xff] }
  0xa8   :  { %4245 = vmatpush3.bf16.msra.mxu1 %v4657_v60  ;;  %2164 = vmatmul.mubr.bf16.gmra.mrb[56].mxu0 %v5503_v38  ;;  %v4667_v60 = vld [vmem:[#allocation5 + $0x328] sm:$0xff]   ;;  %v4668_v38 = vld [vmem:[#allocation5 + $0x2f0] sm:$0xff]  }
  0xa9   :  { %4246 = vmatprep.subr.bf16.mxu1 %v4660_v20  ;;  %2171 = vmatprep.mubr.bf16.mxu0 %v5526_v48  ;;  %v4671_v20 = vld [vmem:[#allocation5 + $0x330] sm:$0xff]   ;;  %v4674_v48 = vld [vmem:[#allocation5 + $0x2f8] sm:$0xff]  }
  0xaa   :  { %4311 = vmatpush3.bf16.msra.mxu0 %v4663_v59  ;;  %v4676_v59 = vld [vmem:[#allocation5 + $0x378] sm:$0xff]  }
  0xab   :  { %3627 = vmatmul.mubr.msk.bf16.gmra.mrb[56].mxu1 %vm5211_vm8, %v5278_v9  ;;  %4312 = vmatprep.subr.bf16.mxu0 %v4666_v19  ;;  %v4709_v19 = vld [vmem:[#allocation5 + $0x438] sm:$0xff]  }
  0xac   :  { %3632 = vmatprep.mubr.msk.bf16.mxu1 %vm4873_vm6, %v6496_v28  ;;  %4247 = vmatpush3.bf16.msra.mxu1 %v4661_v30  ;;  %v1705_v30 = vld [vmem:[#allocation2 + $0xe8] sm:$0xff] }
  0xad   :  { %4248 = vmatprep.subr.bf16.mxu1 %v4664_v22  ;;  %v6498_v22 = vld [vmem:[#allocation10_spill] sm:$0xff] }
  0xae   :  { %4313 = vmatpush3.bf16.msra.mxu0 %v4667_v60  ;;  %v5765_v60 = vpack.c.bf16 %v1700_v7, %v1698_v52  ;;  %v6503_v7 = vld [vmem:[#allocation13_spill] sm:$0xff]  ;;  %v2490_v52 = vld [vmem:[#allocation2 + $0x78] sm:$0xff] }
  0xaf   :  { %4314 = vmatprep.subr.bf16.mxu0 %v4670_v23  ;;  %v5767_v23 = vpack.c.bf16 %v1705_v30, %v1703_v47  ;;  %v6504_v47 = vand.u32 7, %v5659_v40  ;;  %v1707_v30 = vld [vmem:[#allocation2 + $0xf8] sm:$0xff] }
  0xb0   :  { %4249 = vmatpush3.bf16.msra.mxu1 %v4665_v25  ;;  %2172 = vmatmul.mubr.bf16.gmra.mrb[60].mxu0 %v5577_v33  ;;  %v4677_v25 = vld [vmem:[#allocation5 + $0x338] sm:$0xff]   ;;  %v4678_v33 = vld [vmem:[#allocation5 + $0x3c0] sm:$0xff]  }
  0xb1   :  { %4250 = vmatprep.subr.bf16.mxu1 %v4668_v38  ;;  %2179 = vmatprep.mubr.bf16.mxu0 %v5755_v11  ;;  %v4680_v38 = vld [vmem:[#allocation5 + $0x440] sm:$0xff]   ;;  %vm5780_vm9 = vcmp.ne.s32.totalorder %v6504_v47, 0 }
  0xb2   :  { %4315 = vmatpush3.bf16.msra.mxu0 %v4671_v20  ;;  %v6502_v20 = vand.u32 7, %v5529_v17  ;;  %v6510_v17 = vld [vmem:[#allocation14_spill] sm:$0xff]  ;;  %v1708_v47 = vld [vmem:[#allocation2 + $0x100] sm:$0xff] }
  0xb3   :  { %3637 = vmatmul.mubr.msk.bf16.gmra.mrb[60].mxu1 %vm4873_vm6, %v6498_v22  ;;  %4316 = vmatprep.subr.bf16.mxu0 %v4676_v59  ;;  %v1709_v59 = vld [vmem:[#allocation2 + $0x108] sm:$0xff] }
  0xb4   :  { %3642 = vmatprep.mubr.msk.bf16.mxu1 %vm5001_vm12, %v6499_v18  ;;  %4251 = vmatpush3.bf16.msra.mxu1 %v4669_v34  ;;  %v1704_v34 = vld [vmem:[#allocation2 + $0xe0] sm:$0xff]  ;;  %vm4545_vm5 = vcmp.ne.s32.totalorder %v6502_v20, 7  ;;  %v1706_v20 = vld [vmem:[#allocation2 + $0xf0] sm:$0xff] }
  0xb5   :  { %4252 = vmatprep.subr.bf16.mxu1 %v4674_v48  ;;  %vm5793_vm11 = vmpackc.low %vm4544_vm10, %vm4545_vm5  ;;  %v202_v48 = vld [vmem:[#allocation2 + $0x140] sm:$0x7f] }
  0xb6   :  { %4317 = vmatpush3.bf16.msra.mxu0 %v4677_v25  ;;  %v5797_v25 = vpack.c.bf16 %v1704_v34, %v1702_v53  ;;  %v5813_v53 = vpack.c.bf16 %v1708_v47, %v1706_v20  ;;  %v4672_v34 = vld [vmem:[%s6287_s0 + $0x74] ss:$8 sps:$4 sm:$0xff]   ;;  %v6520_v47 = vand.u32 7, %v5656_v61  ;;  %v4681_v61 = vld [vmem:[#allocation5 + $0x400] sm:$0xff]  }
  0xb7   :  { %4430 = vmatprep.subr.bf16.mxu0 %v4680_v38  ;;  %v6514_v38 = vld [vmem:[#allocation17_spill] sm:$0xff] }
  0xb8   :  { %4253 = vmatpush3.bf16.msra.mxu1 %v4675_v21  ;;  %2180 = vmatmul.mubr.bf16.gmra.mrb[64].mxu0 %v5765_v60  ;;  %6516 = vst [vmem:[#allocation16_spill] sm:$0xff] %v5813_v53  ;;  %vm5836_vm5 = vcmp.ne.s32.totalorder %v6520_v47, 7  ;;  %v4688_v47 = vld [vmem:[#allocation5 + $0x450] sm:$0xff]  }
  0xb9   :  { %4366 = vmatprep.subr.bf16.mxu1 %v4678_v33  ;;  %2187 = vmatprep.mubr.bf16.mxu0 %v5767_v23  ;;  %v5803_v33 = vpack.c.bf16 %v1709_v59, %v1707_v30  ;;  %v4673_v30 = vld [vmem:[%s6287_s0 + $0x70] ss:$8 sps:$4 sm:$0xff]   ;;  %v6517_v59 = vand.u32 7, %v5659_v40  ;;  %v4679_v40 = vld [vmem:[#allocation5 + $0x380] sm:$0xff]  }
  0xbb   :  { %3647 = vmatmul.mubr.msk.bf16.gmra.mrb[64].mxu1 %vm5001_vm12, %v6503_v7  ;;  %vm5830_vm10 = vcmp.ne.s32.totalorder %v6517_v59, 7  ;;  %v4685_v59 = vld [vmem:[#allocation5 + $0x408] sm:$0xff]  }
  0xbc   :  { %3652 = vmatprep.mubr.msk.bf16.mxu1 %vm5131_vm3, %v6510_v17 }
  0xc0   :  { %2188 = vmatmul.mubr.bf16.gmra.mrb[68].mxu0 %v5797_v25 }
  0xc1   :  { %2195 = vmatprep.mubr.bf16.mxu0 %v5803_v33 }
  0xc3   :  { %3657 = vmatmul.mubr.msk.bf16.gmra.mrb[68].mxu1 %vm5131_vm3, %v6514_v38 }
  0xc4   :  { %3662 = vmatprep.mubr.msk.bf16.mxu1 %vm5238_vm13, %v6515_v36 }
  0xc8   :  { %2196 = vmatmul.mubr.bf16.gmra.mrb[72].mxu0 %v5813_v53 }
  0xc9   :  { %2203 = vmatprep.mubr.bf16.mxu0 %v4672_v34  ;;  %v4682_v34 = vld [vmem:[#allocation5 + $0x3c8] sm:$0xff]  }
  0xcb   :  { %3667 = vmatmul.mubr.msk.bf16.gmra.mrb[72].mxu1 %vm5238_vm13, %v5287_v46 }
  0xcc   :  { %3672 = vmatprep.mubr.msk.bf16.mxu1 %vm5686_vm0, %v5719_v10 }
  0xd0   :  { %2204 = vmatmul.mubr.bf16.gmra.mrb[76].mxu0 %v4673_v30  ;;  %v4684_v30 = vld [vmem:[#allocation5 + $0x448] sm:$0xff]  }
  0xd1   :  { %3762 = vmatprep.mubr.msk.bf16.mxu0 %vm5101_vm15, %v5113_v37  ;;  %v6524_v37 = vld [vmem:[#allocation20_spill] sm:$0xff] }
  0xd3   :  { %3677 = vmatmul.mubr.msk.bf16.gmra.mrb[76].mxu1 %vm5686_vm0, %v5722_v35 }
  0xd4   :  { %3682 = vmatprep.mubr.msk.bf16.mxu1 %vm6523_vm7, %v5326_v49  ;;  %v4683_v49 = vld [vmem:[#allocation5 + $0x388] sm:$0xff]  }
  0xd8   :  { %3767 = vmatmul.mubr.msk.bf16.vlgmr.msra.gmra.mrb[80].mxu0 %vm5101_vm15, %v6492_v55  ;;  %v4690_v55 = vld [vmem:[#allocation5 + $0x3d8] sm:$0xff]   ;;  %vm6526_vm15 = vnez %v6437_v24 }
  0xd9   :  { %4431 = vmatpush3.bf16.msra.mxu0 %v4681_v61  ;;  %3772 = vmatprep.mubr.msk.bf16.mxu0 %vm5211_vm8, %v6495_v12  ;;  %v4692_v61 = vld [vmem:[#allocation5 + $0x458] sm:$0xff]  }
  0xda   :  { %4432 = vmatprep.subr.bf16.mxu0 %v4684_v30  ;;  %v4691_v12 = vld [vmem:[#allocation5 + $0x398] sm:$0xff]   ;;  %v4697_v30 = vld [vmem:[#allocation5 + $0x420] sm:$0xff]  }
  0xdb   :  { %3687 = vmatmul.mubr.msk.bf16.vlgmr.msra.gmra.mrb[80].mxu1 %vm6523_vm7, %v5367_v5  ;;  %v4689_v5 = vld [vmem:[#allocation5 + $0x410] sm:$0xff]  }
  0xdc   :  { %4367 = vmatpush3.bf16.msra.mxu1 %v4679_v40  ;;  %3692 = vmatprep.mubr.msk.bf16.mxu1 %vm6525_vm14, %v6524_v37  ;;  %v4693_v40 = vld [vmem:[#allocation5 + $0x418] sm:$0xff]  }
  0xdd   :  { %4368 = vmatprep.subr.bf16.mxu1 %v4682_v34  ;;  %4433 = vmatpush3.bf16.msra.mxu0 %v4685_v59  ;;  %v4695_v34 = vld [vmem:[#allocation5 + $0x3a0] sm:$0xff]   ;;  %v4698_v59 = vld [vmem:[#allocation5 + $0x3e8] sm:$0xff]  }
  0xde   :  { %4434 = vmatprep.subr.bf16.mxu0 %v4688_v47  ;;  %v4704_v47 = vld [vmem:[#allocation5 + $0x470] sm:$0xff]  }
  0xe0   :  { %4369 = vmatpush3.bf16.msra.mxu1 %v4683_v49  ;;  %3777 = vmatmul.mubr.msk.bf16.gmra.mrb[84].mxu0 %vm5211_vm8, %v5278_v9  ;;  %v4696_v9 = vld [vmem:[#allocation5 + $0x460] sm:$0xff]   ;;  %v4699_v49 = vld [vmem:[#allocation5 + $0x3a8] sm:$0xff]  }
  0xe1   :  { %4370 = vmatprep.subr.bf16.mxu1 %v4686_v44  ;;  %3782 = vmatprep.mubr.msk.bf16.mxu0 %vm4873_vm6, %v6496_v28  ;;  %v4700_v28 = vld [vmem:[#allocation5 + $0x468] sm:$0xff]   ;;  %v4703_v44 = vld [vmem:[#allocation5 + $0x3b0] sm:$0xff]  }
  0xe2   :  { %4435 = vmatpush3.bf16.msra.mxu0 %v4689_v5  ;;  %v4706_v5 = vld [vmem:[#allocation5 + $0x3f8] sm:$0xff]  }
  0xe3   :  { %3697 = vmatmul.mubr.msk.bf16.gmra.mrb[84].mxu1 %vm6525_vm14, %v5423_v16  ;;  %4436 = vmatprep.subr.bf16.mxu0 %v4692_v61 }
  0xe4   :  { %3702 = vmatprep.mubr.msk.bf16.mxu1 %vm6526_vm15, %v5437_v62  ;;  %4371 = vmatpush3.bf16.msra.mxu1 %v4687_v15  ;;  %v4705_v15 = vld [vmem:[#allocation5 + $0x430] sm:$0xff]  }
  0xe5   :  { %4372 = vmatprep.subr.bf16.mxu1 %v4690_v55  ;;  %v4707_v55 = vld [vmem:[#allocation5 + $0x3b8] sm:$0xff]  }
  0xe6   :  { %4437 = vmatpush3.bf16.msra.mxu0 %v4693_v40  ;;  %v385_v40 = vrot.slane %v202_v48, 7 }
  0xe7   :  { %4438 = vmatprep.subr.bf16.mxu0 %v4696_v9 }
  0xe8   :  { %4373 = vmatpush3.bf16.msra.mxu1 %v4691_v12  ;;  %3787 = vmatmul.mubr.msk.bf16.gmra.mrb[88].mxu0 %vm4873_vm6, %v6498_v22  ;;  %v4702_v22 = vld [vmem:[#allocation5 + $0x3f0] sm:$0xff]   ;;  %vm6527_vm6 = vnez %v6474_v41 }
  0xe9   :  { %4374 = vmatprep.subr.bf16.mxu1 %v4694_v1  ;;  %3792 = vmatprep.mubr.msk.bf16.mxu0 %vm5001_vm12, %v6499_v18  ;;  %v4708_v18 = vld [vmem:[#allocation5 + $0x478] sm:$0xff]  }
  0xea   :  { %4439 = vmatpush3.bf16.msra.mxu0 %v4697_v30 }
  0xeb   :  { %3707 = vmatmul.mubr.msk.bf16.gmra.mrb[88].mxu1 %vm6526_vm15, %v5488_v14  ;;  %4440 = vmatprep.subr.bf16.mxu0 %v4700_v28 }
  0xec   :  { %3712 = vmatprep.mubr.msk.bf16.mxu1 %vm5507_vm2, %v5511_v39  ;;  %4375 = vmatpush3.bf16.msra.mxu1 %v4695_v34 }
  0xed   :  { %4376 = vmatprep.subr.bf16.mxu1 %v4698_v59 }
  0xee   :  { %4441 = vmatpush3.bf16.msra.mxu0 %v4701_v13 }
  0xef   :  { %4442 = vmatprep.subr.bf16.mxu0 %v4704_v47 }
  0xf0   :  { %4377 = vmatpush3.bf16.msra.mxu1 %v4699_v49  ;;  %3797 = vmatmul.mubr.msk.bf16.gmra.mrb[92].mxu0 %vm5001_vm12, %v6503_v7  ;;  %v203_v7 = vld [vmem:[#allocation2 + $0x148] sm:$0x7f]  ;;  %vm6529_vm12 = vcmask 1040384  }
  0xf1   :  { %4378 = vmatprep.subr.bf16.mxu1 %v4702_v22  ;;  %3802 = vmatprep.mubr.msk.bf16.mxu0 %vm5131_vm3, %v6510_v17  ;;  %v383_v17 = vrot.slane %v5702_v42, 7  ;;  %v387_v61 = vrot.slane %v203_v7, 7 }
  0xf2   :  { %4443 = vmatpush3.bf16.msra.mxu0 %v4705_v15 }
  0xf3   :  { %3717 = vmatmul.mubr.msk.bf16.gmra.mrb[92].mxu1 %vm5507_vm2, %v5567_v45  ;;  %4444 = vmatprep.subr.bf16.mxu0 %v4708_v18 }
  0xf4   :  { %3722 = vmatprep.mubr.msk.bf16.mxu1 %vm5455_vm1, %v5579_v8  ;;  %4379 = vmatpush3.bf16.msra.mxu1 %v4703_v44  ;;  %v6531_v44 = vrot.slane %v5695_v51, 7 }
  0xf5   :  { %4380 = vmatprep.subr.bf16.mxu1 %v4706_v5 }
  0xf6   :  { %4445 = vmatpush3.bf16.msra.mxu0 %v4709_v19 }
  0xf8   :  { %4381 = vmatpush3.bf16.msra.mxu1 %v4707_v55  ;;  %3807 = vmatmul.mubr.msk.bf16.gmra.mrb[96].mxu0 %vm5131_vm3, %v6514_v38  ;;  %v6528_v38 = vrot.slane %v5693_v2, 7  ;;  %vm6530_vm3 = vmmov %vm6529_vm12 }
  0xf9   :  { %3812 = vmatprep.mubr.msk.bf16.mxu0 %vm5238_vm13, %v6515_v36  ;;  %v388_v31 = vsel %vm6530_vm3, %v383_v17, %v387_v61  ;;  %vm6532_vm8 = vmmov %vm6530_vm3 }
  0xfa   :  { %v384_v36 = vsel %vm6529_vm12, %v6528_v38, %v383_v17  ;;  %v382_v15 = vsel %vm6532_vm8, %v6531_v44, %v383_v17 }
  0xfb   :  { %3727 = vmatmul.mubr.msk.bf16.gmra.mrb[96].mxu1 %vm5455_vm1, %v5440_v54  ;;  %v3831_v34 = vpack.c.bf16 %v388_v31, %v384_v36 }
  0xfc   :  { %3732 = vmatprep.mubr.msk.bf16.mxu1 %vm5497_vm4, %v5615_v56 }
 0x100   :  { %3817 = vmatmul.mubr.msk.bf16.gmra.mrb[100].mxu0 %vm5238_vm13, %v5287_v46  ;;  %vm6533_vm13 = vmmov %vm6530_vm3 }
 0x101   :  { %3822 = vmatprep.mubr.msk.bf16.mxu0 %vm5686_vm0, %v5719_v10  ;;  %v386_v5 = vsel %vm6533_vm13, %v383_v17, %v385_v40 }
 0x102   :  { %v3836_v57 = vpack.c.bf16 %v386_v5, %v382_v15  ;;  %v2494_v15 = vld [vmem:[#allocation2 + $0x98] sm:$0xff]  ;;  %v2496_v5 = vld [vmem:[#allocation2 + $0xa8] sm:$0xff] }
 0x103   :  { %3737 = vmatmul.mubr.msk.bf16.gmra.mrb[100].mxu1 %vm5497_vm4, %v5636_v26 }
 0x104   :  { %3742 = vmatprep.mubr.msk.bf16.mxu1 %vm6527_vm6, %v5638_v29 }
 0x106   :  { %v3934_v46 = vpop.f32.mrb[0].mxu0  ;;  %v3958_v12 = vpop.f32.mrb[0].mxu1 }
 0x107   :  { %v3935_v1 = vpop.f32.mrb[1].mxu0  ;;  %v3959_v9 = vpop.f32.mrb[1].mxu1 }
 0x108   :  { %v5930_v30 = vadd.f32 %v3935_v1, %v3934_v46  ;;  %v5932_v10 = vadd.f32 %v3959_v9, %v3958_v12  ;;  %v3937_v59 = vpop.f32.mrb[2].mxu0  ;;  %v3961_v28 = vpop.f32.mrb[2].mxu1  ;;  %3827 = vmatmul.mubr.msk.bf16.gmra.mrb[104].mxu0 %vm5686_vm0, %v5722_v35  ;;  %vm6534_vm0 = vnez %v6509_v3  ;;  %v2492_v3 = vld [vmem:[#allocation2 + $0x88] sm:$0xff] }
 0x109   :  { %v3938_v49 = vpop.f32.mrb[3].mxu0  ;;  %v3962_v13 = vpop.f32.mrb[3].mxu1  ;;  %vm6535_vm7 = vmpackc.low %vm5780_vm9, %vm6534_vm0  ;;  %v2520_v40 = vpack.c.bf16 %v2492_v3, %v2490_v52 }
 0x10a   :  { %v5940_v22 = vadd.f32 %v3938_v49, %v3937_v59  ;;  %v5942_v47 = vadd.f32 %v3962_v13, %v3961_v28  ;;  %3832 = vmatprep.mubr.msk.bf16.mxu0 %vm6535_vm7, %v3831_v34  ;;  %vm6536_vm12 = vmmov %vm6535_vm7 }
 0x10b   :  { %3747 = vmatmul.mubr.msk.bf16.gmra.mrb[104].mxu1 %vm6527_vm6, %v5661_v27 }
 0x10c   :  { %3752 = vmatprep.mubr.msk.bf16.mxu1 %vm5793_vm11, %v5735_v32 }
 0x10e   :  { %v3940_v35 = vpop.f32.mrb[4].mxu0  ;;  %v3964_v18 = vpop.f32.mrb[4].mxu1 }
 0x10f   :  { %v3941_v55 = vpop.f32.mrb[5].mxu0  ;;  %v3965_v19 = vpop.f32.mrb[5].mxu1 }
 0x110   :  { %v5956_v7 = vadd.f32 %v3941_v55, %v3940_v35  ;;  %v5958_v61 = vadd.f32 %v3965_v19, %v3964_v18  ;;  %v3943_v17 = vpop.f32.mrb[6].mxu0  ;;  %v3967_v48 = vpop.f32.mrb[6].mxu1  ;;  %3837 = vmatmul.mubr.msk.bf16.gmra.mrb[108].mxu0 %vm6536_vm12, %v3836_v57  ;;  %v2522_v35 = vpack.c.bf16 %v2496_v5, %v2494_v15  ;;  %v2495_v18 = vld [vmem:[#allocation2 + $0xa0] sm:$0xff] }
 0x111   :  { %v3944_v38 = vpop.f32.mrb[7].mxu0  ;;  %v3968_v36 = vpop.f32.mrb[7].mxu1  ;;  %3842 = vmatprep.mubr.msk.bf16.mxu0 %vm6525_vm14, %v6524_v37 }
 0x112   :  { %v5968_v31 = vadd.f32 %v3944_v38, %v3943_v17  ;;  %v5970_v46 = vadd.f32 %v3968_v36, %v3967_v48 }
 0x113   :  { %3757 = vmatmul.mubr.msk.bf16.gmra.mrb[108].mxu1 %vm5793_vm11, %v5745_v58 }
 0x114   :  { %2950 = vmatprep.mubr.bf16.mxu1 %v5678_v43 }
 0x116   :  { %v3946_v12 = vpop.f32.mrb[8].mxu0 }
 0x117   :  { %v3947_v1 = vpop.f32.mrb[9].mxu0 }
 0x118   :  { %3847 = vmatmul.mubr.msk.bf16.vlgmr.msra.gmra.mrb[112].mxu0 %vm6525_vm14, %v5423_v16  ;;  %v3970_v9 = vpop.f32.mrb[8].mxu1  ;;  %v5979_v34 = vadd.f32 %v3947_v1, %v3946_v12  ;;  %v3949_v59 = vpop.f32.mrb[10].mxu0  ;;  %v2491_v16 = vld [vmem:[#allocation2 + $0x80] sm:$0xff] }
 0x119   :  { %v3971_v43 = vpop.f32.mrb[9].mxu1  ;;  %v3950_v28 = vpop.f32.mrb[11].mxu0  ;;  %3852 = vmatprep.mubr.msk.bf16.mxu0 %vm6526_vm15, %v5437_v62  ;;  %v2493_v62 = vld [vmem:[#allocation2 + $0x90] sm:$0xff] }
 0x11a   :  { %v5985_v37 = vadd.f32 %v3971_v43, %v3970_v9  ;;  %v3973_v49 = vpop.f32.mrb[10].mxu1  ;;  %v5987_v13 = vadd.f32 %v3950_v28, %v3949_v59  ;;  %v2521_v52 = vpack.c.bf16 %v2495_v18, %v2493_v62 }
 0x11b   :  { %2951 = vmatmul.mubr.bf16.vlgmr.msra.gmra.mrb[112].mxu1 %v5698_v0  ;;  %v3974_v44 = vpop.f32.mrb[11].mxu1  ;;  %v2519_v0 = vpack.c.bf16 %v2491_v16, %v2489_v50 }
 0x11c   :  { %2958 = vmatprep.mubr.bf16.mxu1 %v2520_v40  ;;  %v5989_v57 = vadd.f32 %v3974_v44, %v3973_v49 }
 0x120   :  { %3857 = vmatmul.mubr.msk.bf16.gmra.mrb[116].mxu0 %vm6526_vm15, %v5488_v14 }
 0x121   :  { %3862 = vmatprep.mubr.msk.bf16.mxu0 %vm5507_vm2, %v5511_v39  ;;  %v6015_v39 = vld [vmem:[%s6289_s2] ss:$0 sm:$0xff] }
 0x122   :  { %v1168_v4 = vadd.f32 %v5930_v30, %v6015_v39 }
 0x123   :  { %2959 = vmatmul.mubr.bf16.gmra.mrb[116].mxu1 %v2519_v0  ;;  %v3952_v55 = vpop.f32.mrb[12].mxu0 }
 0x124   :  { %2966 = vmatprep.mubr.bf16.mxu1 %v2522_v35  ;;  %v3953_v17 = vpop.f32.mrb[13].mxu0 }
 0x125   :  { %v5997_v48 = vadd.f32 %v3953_v17, %v3952_v55  ;;  %v3955_v36 = vpop.f32.mrb[14].mxu0 }
 0x126   :  { %v3976_v19 = vpop.f32.mrb[12].mxu1  ;;  %v3956_v14 = vpop.f32.mrb[15].mxu0 }
 0x127   :  { %v3977_v38 = vpop.f32.mrb[13].mxu1  ;;  %v6001_v12 = vadd.f32 %v3956_v14, %v3955_v36 }
 0x128   :  { %v5999_v3 = vadd.f32 %v3977_v38, %v3976_v19  ;;  %v3979_v24 = vpop.f32.mrb[14].mxu1  ;;  %3867 = vmatmul.mubr.msk.bf16.gmra.mrb[120].mxu0 %vm5507_vm2, %v5567_v45  ;;  %vm6540_vm2 = vmpackc.low %vm5830_vm10, %vm5836_vm5 }
 0x129   :  { %v3980_v40 = vpop.f32.mrb[15].mxu1  ;;  %3872 = vmatprep.mubr.msk.bf16.mxu0 %vm5455_vm1, %v5579_v8  ;;  %vm6542_vm14 = vmmov %vm6540_vm2 }
 0x12a   :  { %v6003_v1 = vadd.f32 %v3980_v40, %v3979_v24  ;;  %v1171_v24 = vadd.f32 %v5968_v31, %v6015_v39  ;;  %v550_v31 = vld [vmem:[#allocation2 + $0x158] sm:$0x1] }
 0x12b   :  { %2967 = vmatmul.mubr.bf16.gmra.mrb[120].mxu1 %v2521_v52  ;;  %v4062_v9 = vpop.f32.mrb[16].mxu0 }
 0x12c   :  { %2974 = vmatprep.mubr.bf16.mxu1 %v5755_v11  ;;  %v4063_v43 = vpop.f32.mrb[17].mxu0  ;;  %v1169_v11 = vadd.f32 %v5940_v22, %v6015_v39 }
 0x12d   :  { %v4064_v49 = vadd.f32 %v4063_v43, %v4062_v9  ;;  %v4065_v50 = vpop.f32.mrb[18].mxu0 }
 0x12e   :  { %v3998_v59 = vpop.f32.mrb[16].mxu1  ;;  %v4066_v44 = vpop.f32.mrb[19].mxu0 }
 0x12f   :  { %v3999_v28 = vpop.f32.mrb[17].mxu1  ;;  %v4067_v15 = vadd.f32 %v4066_v44, %v4065_v50  ;;  %v734_v44 = vrot.slane %v550_v31, 1 }
 0x130   :  { %v4000_v45 = vadd.f32 %v3999_v28, %v3998_v59  ;;  %v4001_v16 = vpop.f32.mrb[18].mxu1  ;;  %3877 = vmatmul.mubr.msk.bf16.gmra.mrb[124].mxu0 %vm5455_vm1, %v5440_v54  ;;  %v1170_v54 = vadd.f32 %v5956_v7, %v6015_v39  ;;  %v2510_v59 = vld [vmem:[#allocation2 + $0x118] sm:$0xff] }
 0x131   :  { %v4002_v8 = vpop.f32.mrb[19].mxu1  ;;  %3882 = vmatprep.mubr.msk.bf16.mxu0 %vm5497_vm4, %v5615_v56 }
 0x132   :  { %v1409_v5 = vadd.f32 %v4000_v45, %v1168_v4  ;;  %v4003_v0 = vadd.f32 %v4002_v8, %v4001_v16  ;;  %v2530_v16 = vpack.c.bf16 %v5693_v2, %v2510_v59 }
 0x133   :  { %2975 = vmatmul.mubr.bf16.gmra.mrb[124].mxu1 %v5765_v60  ;;  %v4068_v62 = vpop.f32.mrb[20].mxu0 }
 0x134   :  { %v6028_v30 = vadd.f32 %v4064_v49, %v1409_v5  ;;  %v1410_v35 = vadd.f32 %v4003_v0, %v1169_v11  ;;  %2982 = vmatprep.mubr.bf16.mxu1 %v5767_v23  ;;  %v4069_v55 = vpop.f32.mrb[21].mxu0  ;;  %v6537_v0 = vld [vmem:[#allocation16_spill] sm:$0xff] }
 0x135   :  { %v4070_v17 = vadd.f32 %v4069_v55, %v4068_v62  ;;  %v4071_v63 = vpop.f32.mrb[22].mxu0  ;;  %v6538_v62 = vld [vmem:[#allocation21_spill] sm:$0xff] }
 0x136   :  { %v6031_v18 = vadd.f32 %v4067_v15, %v1410_v35  ;;  %v4004_v22 = vpop.f32.mrb[20].mxu1  ;;  %v4072_v36 = vpop.f32.mrb[23].mxu0  ;;  %v1173_v15 = vadd.f32 %v5987_v13, %v6015_v39  ;;  %v2509_v35 = vld [vmem:[#allocation2 + $0x110] sm:$0xff] }
 0x137   :  { %v4005_v19 = vpop.f32.mrb[21].mxu1  ;;  %v4073_v52 = vadd.f32 %v4072_v36, %v4071_v63  ;;  %v1174_v36 = vadd.f32 %v5997_v48, %v6015_v39 }
 0x138   :  { %v4006_v60 = vadd.f32 %v4005_v19, %v4004_v22  ;;  %v4007_v38 = vpop.f32.mrb[22].mxu1  ;;  %3887 = vmatmul.mubr.msk.bf16.gmra.mrb[128].mxu0 %vm5497_vm4, %v5636_v26  ;;  %vm6539_vm4 = vcmask 1046528   ;;  %v549_v22 = vld [vmem:[#allocation2 + $0x150] sm:$0x1] }
 0x139   :  { %v4008_v56 = vpop.f32.mrb[23].mxu1  ;;  %3892 = vmatprep.mubr.msk.bf16.mxu0 %vm6527_vm6, %v5638_v29  ;;  %v735_v13 = vsel %vm6539_vm4, %v6538_v62, %v734_v44  ;;  %vm6541_vm1 = vmmov %vm6539_vm4 }
 0x13a   :  { %v1411_v23 = vadd.f32 %v4006_v60, %v1170_v54  ;;  %v4009_v14 = vadd.f32 %v4008_v56, %v4007_v38  ;;  %v2529_v60 = vpack.c.bf16 %v5695_v51, %v2509_v35  ;;  %v732_v38 = vrot.slane %v549_v22, 1 }
 0x13b   :  { %2983 = vmatmul.mubr.bf16.gmra.mrb[128].mxu1 %v5797_v25  ;;  %v4074_v9 = vpop.f32.mrb[24].mxu0  ;;  %v1172_v25 = vadd.f32 %v5979_v34, %v6015_v39  ;;  %v1178_v22 = vadd.f32 %v5958_v61, %v6015_v39 }
 0x13c   :  { %v6044_v7 = vadd.f32 %v4070_v17, %v1411_v23  ;;  %v1412_v40 = vadd.f32 %v4009_v14, %v1171_v24  ;;  %2990 = vmatprep.mubr.bf16.mxu1 %v5803_v33  ;;  %v4075_v49 = vpop.f32.mrb[25].mxu0  ;;  %v2532_v23 = vpack.c.bf16 %v5702_v42, %v5702_v42  ;;  %v733_v51 = vsel %vm6541_vm1, %v6538_v62, %v732_v38 }
 0x13d   :  { %v4076_v26 = vadd.f32 %v4075_v49, %v4074_v9  ;;  %v4077_v50 = vpop.f32.mrb[26].mxu0  ;;  %v1175_v9 = vadd.f32 %v6001_v12, %v6015_v39 }
 0x13e   :  { %v6047_v43 = vadd.f32 %v4073_v52, %v1412_v40  ;;  %v4010_v28 = vpop.f32.mrb[24].mxu1  ;;  %v4078_v45 = vpop.f32.mrb[27].mxu0 }
 0x13f   :  { %v4011_v6 = vpop.f32.mrb[25].mxu1  ;;  %v4079_v8 = vadd.f32 %v4078_v45, %v4077_v50 }
 0x140   :  { %v4012_v4 = vadd.f32 %v4011_v6, %v4010_v28  ;;  %v4013_v29 = vpop.f32.mrb[26].mxu1  ;;  %3897 = vmatmul.mubr.msk.bf16.gmra.mrb[132].mxu0 %vm6527_vm6, %v5661_v27 }
 0x141   :  { %v4014_v33 = vpop.f32.mrb[27].mxu1  ;;  %3902 = vmatprep.mubr.msk.bf16.mxu0 %vm5793_vm11, %v5735_v32  ;;  %v3911_v32 = vpack.c.bf16 %v735_v13, %v6538_v62 }
 0x142   :  { %v1413_v11 = vadd.f32 %v4012_v4, %v1172_v25  ;;  %v4015_v5 = vadd.f32 %v4014_v33, %v4013_v29  ;;  %v1176_v25 = vadd.f32 %v5932_v10, %v6015_v39  ;;  %v1177_v33 = vadd.f32 %v5942_v47, %v6015_v39 }
 0x143   :  { %2991 = vmatmul.mubr.bf16.gmra.mrb[132].mxu1 %v6537_v0  ;;  %v4080_v55 = vpop.f32.mrb[28].mxu0 }
 0x144   :  { %v6061_v34 = vadd.f32 %v4076_v26, %v1413_v11  ;;  %v1414_v2 = vadd.f32 %v4015_v5, %v1173_v15  ;;  %2998 = vmatprep.mubr.bf16.mxu1 %v2530_v16  ;;  %v4081_v27 = vpop.f32.mrb[29].mxu0 }
 0x145   :  { %v4082_v63 = vadd.f32 %v4081_v27, %v4080_v55  ;;  %v4083_v54 = vpop.f32.mrb[30].mxu0 }
 0x146   :  { %v6065_v19 = vadd.f32 %v4079_v8, %v1414_v2  ;;  %v4016_v41 = vpop.f32.mrb[28].mxu1  ;;  %v4084_v24 = vpop.f32.mrb[31].mxu0 }
 0x147   :  { %v4017_v17 = vpop.f32.mrb[29].mxu1  ;;  %v4085_v40 = vadd.f32 %v4084_v24, %v4083_v54 }
 0x148   :  { %v4018_v56 = vadd.f32 %v4017_v17, %v4016_v41  ;;  %v4019_v52 = vpop.f32.mrb[30].mxu1  ;;  %3907 = vmatmul.mubr.msk.bf16.gmra.mrb[136].mxu0 %vm5793_vm11, %v5745_v58  ;;  %v3916_v58 = vpack.c.bf16 %v733_v51, %v6538_v62  ;;  %v1179_v17 = vadd.f32 %v5970_v46, %v6015_v39  ;;  %v1181_v51 = vadd.f32 %v5989_v57, %v6015_v39 }
 0x149   :  { %v4020_v14 = vpop.f32.mrb[31].mxu1  ;;  %3912 = vmatprep.mubr.msk.bf16.mxu0 %vm6540_vm2, %v3911_v32 }
 0x14a   :  { %v1415_v59 = vadd.f32 %v4018_v56, %v1174_v36  ;;  %v4021_v31 = vadd.f32 %v4020_v14, %v4019_v52  ;;  %v1180_v14 = vadd.f32 %v5985_v37, %v6015_v39 }
 0x14b   :  { %2999 = vmatmul.mubr.bf16.gmra.mrb[136].mxu1 %v2529_v60  ;;  %v4086_v12 = vpop.f32.mrb[32].mxu0 }
 0x14c   :  { %v6085_v42 = vadd.f32 %v4082_v63, %v1415_v59  ;;  %v1416_v48 = vadd.f32 %v4021_v31, %v1175_v9  ;;  %3006 = vmatprep.mubr.bf16.mxu1 %v2532_v23  ;;  %v4087_v21 = vpop.f32.mrb[33].mxu0 }
 0x14d   :  { %v4088_v26 = vadd.f32 %v4087_v21, %v4086_v12  ;;  %v4089_v50 = vpop.f32.mrb[34].mxu0 }
 0x14e   :  { %v6087_v28 = vadd.f32 %v4085_v40, %v1416_v48  ;;  %v4022_v49 = vpop.f32.mrb[32].mxu1  ;;  %v4090_v45 = vpop.f32.mrb[35].mxu0 }
 0x14f   :  { %v4023_v6 = vpop.f32.mrb[33].mxu1  ;;  %v4091_v44 = vadd.f32 %v4090_v45, %v4089_v50 }
 0x150   :  { %v4024_v4 = vadd.f32 %v4023_v6, %v4022_v49  ;;  %v4025_v29 = vpop.f32.mrb[34].mxu1  ;;  %3917 = vmatmul.mubr.msk.bf16.gmra.mrb[140].mxu0 %vm6542_vm14, %v3916_v58 }
 0x151   :  { %v4026_v16 = vpop.f32.mrb[35].mxu1 }
 0x152   :  { %v1417_v8 = vadd.f32 %v4024_v4, %v1176_v25  ;;  %v4027_v15 = vadd.f32 %v4026_v16, %v4025_v29  ;;  %v1182_v29 = vadd.f32 %v5999_v3, %v6015_v39 }
 0x153   :  { %3007 = vmatmul.mubr.bf16.gmra.mrb[140].mxu1 %v2532_v23  ;;  %v4092_v5 = vpop.f32.mrb[36].mxu0 }
 0x154   :  { %v6099_v11 = vadd.f32 %v4088_v26, %v1417_v8  ;;  %v1418_v10 = vadd.f32 %v4027_v15, %v1177_v33  ;;  %v4093_v35 = vpop.f32.mrb[37].mxu0  ;;  %v1183_v8 = vadd.f32 %v6003_v1, %v6015_v39 }
 0x155   :  { %v4094_v13 = vadd.f32 %v4093_v35, %v4092_v5  ;;  %v4095_v47 = vpop.f32.mrb[38].mxu0 }
 0x156   :  { %v6101_v0 = vadd.f32 %v4091_v44, %v1418_v10  ;;  %v4028_v2 = vpop.f32.mrb[36].mxu1  ;;  %v4096_v53 = vpop.f32.mrb[39].mxu0 }
 0x157   :  { %v4029_v62 = vpop.f32.mrb[37].mxu1  ;;  %v4097_v27 = vadd.f32 %v4096_v53, %v4095_v47 }
 0x158   :  { %v4030_v20 = vadd.f32 %v4029_v62, %v4028_v2  ;;  %v4031_v55 = vpop.f32.mrb[38].mxu1 }
 0x159   :  { %v4032_v41 = vpop.f32.mrb[39].mxu1 }
 0x15a   :  { %v1419_v63 = vadd.f32 %v4030_v20, %v1178_v22  ;;  %v4033_v54 = vadd.f32 %v4032_v41, %v4031_v55 }
 0x15b   :  { %v4098_v38 = vpop.f32.mrb[40].mxu0 }
 0x15c   :  { %v6107_v60 = vadd.f32 %v4094_v13, %v1419_v63  ;;  %v1420_v32 = vadd.f32 %v4033_v54, %v1179_v17  ;;  %v4099_v52 = vpop.f32.mrb[41].mxu0 }
 0x15d   :  { %v4100_v61 = vadd.f32 %v4099_v52, %v4098_v38  ;;  %v4101_v23 = vpop.f32.mrb[42].mxu0 }
 0x15e   :  { %v6109_v36 = vadd.f32 %v4097_v27, %v1420_v32  ;;  %v4034_v56 = vpop.f32.mrb[40].mxu1  ;;  %v4102_v59 = vpop.f32.mrb[43].mxu0 }
 0x15f   :  { %v4035_v24 = vpop.f32.mrb[41].mxu1  ;;  %v4103_v31 = vadd.f32 %v4102_v59, %v4101_v23 }
 0x160   :  { %v4036_v40 = vadd.f32 %v4035_v24, %v4034_v56  ;;  %v4037_v9 = vpop.f32.mrb[42].mxu1 }
 0x161   :  { %v4038_v46 = vpop.f32.mrb[43].mxu1 }
 0x162   :  { %v1421_v48 = vadd.f32 %v4036_v40, %v1180_v14  ;;  %v4039_v12 = vadd.f32 %v4038_v46, %v4037_v9 }
 0x163   :  { %v4104_v58 = vpop.f32.mrb[44].mxu0 }
 0x164   :  { %v6115_v49 = vadd.f32 %v4100_v61, %v1421_v48  ;;  %v1422_v21 = vadd.f32 %v4039_v12, %v1181_v51  ;;  %v4105_v50 = vpop.f32.mrb[45].mxu0 }
 0x165   :  { %v4106_v37 = vadd.f32 %v4105_v50, %v4104_v58  ;;  %v4107_v4 = vpop.f32.mrb[46].mxu0 }
 0x166   :  { %v6117_v6 = vadd.f32 %v4103_v31, %v1422_v21  ;;  %v4040_v26 = vpop.f32.mrb[44].mxu1  ;;  %v4108_v44 = vpop.f32.mrb[47].mxu0 }
 0x167   :  { %v4041_v25 = vpop.f32.mrb[45].mxu1  ;;  %v4109_v33 = vadd.f32 %v4108_v44, %v4107_v4 }
 0x168   :  { %v4042_v45 = vadd.f32 %v4041_v25, %v4040_v26  ;;  %v4043_v16 = vpop.f32.mrb[46].mxu1 }
 0x169   :  { %v4044_v57 = vpop.f32.mrb[47].mxu1 }
 0x16a   :  { %v1423_v15 = vadd.f32 %v4042_v45, %v1182_v29  ;;  %v4045_v10 = vadd.f32 %v4044_v57, %v4043_v16 }
 0x16b   :  { %v4190_v35 = vpop.f32.mrb[48].mxu0 }
 0x16c   :  { %v6123_v5 = vadd.f32 %v4106_v37, %v1423_v15  ;;  %v1424_v2 = vadd.f32 %v4045_v10, %v1183_v8  ;;  %v4191_v47 = vpop.f32.mrb[49].mxu0 }
 0x16d   :  { %v4192_v3 = vadd.f32 %v4191_v47, %v4190_v35  ;;  %v4193_v20 = vpop.f32.mrb[50].mxu0 }
 0x16e   :  { %v6125_v62 = vadd.f32 %v4109_v33, %v1424_v2  ;;  %v4126_v13 = vpop.f32.mrb[48].mxu1  ;;  %v4194_v41 = vpop.f32.mrb[51].mxu0 }
 0x16f   :  { %v4127_v22 = vpop.f32.mrb[49].mxu1  ;;  %v4195_v17 = vadd.f32 %v4194_v41, %v4193_v20 }
 0x170   :  { %v4128_v55 = vadd.f32 %v4127_v22, %v4126_v13  ;;  %v4129_v53 = vpop.f32.mrb[50].mxu1 }
 0x171   :  { %v4130_v27 = vpop.f32.mrb[51].mxu1 }
 0x172   :  { %v1971_v1 = vadd.f32 %v4128_v55, %v6028_v30  ;;  %v4131_v39 = vadd.f32 %v4130_v27, %v4129_v53 }
 0x173   :  { %v4196_v32 = vpop.f32.mrb[52].mxu0 }
 0x174   :  { %v6128_v63 = vadd.f32 %v4192_v3, %v1971_v1  ;;  %v1972_v54 = vadd.f32 %v4131_v39, %v6031_v18  ;;  %v4197_v52 = vpop.f32.mrb[53].mxu0 }
 0x175   :  { %v4198_v61 = vadd.f32 %v4197_v52, %v4196_v32  ;;  %v4199_v23 = vpop.f32.mrb[54].mxu0 }
 0x176   :  { %v6131_v38 = vadd.f32 %v4195_v17, %v1972_v54  ;;  %v4132_v56 = vpop.f32.mrb[52].mxu1  ;;  %v4200_v9 = vpop.f32.mrb[55].mxu0 }
 0x177   :  { %v4133_v24 = vpop.f32.mrb[53].mxu1  ;;  %v4201_v46 = vadd.f32 %v4200_v9, %v4199_v23 }
 0x178   :  { %v4134_v14 = vadd.f32 %v4133_v24, %v4132_v56  ;;  %v4135_v40 = vpop.f32.mrb[54].mxu1 }
 0x179   :  { %v4136_v59 = vpop.f32.mrb[55].mxu1 }
 0x17a   :  { %v1973_v30 = vadd.f32 %v4134_v14, %v6044_v7  ;;  %v4137_v31 = vadd.f32 %v4136_v59, %v4135_v40 }
 0x17b   :  { %v4202_v48 = vpop.f32.mrb[56].mxu0 }
 0x17c   :  { %v6134_v51 = vadd.f32 %v4198_v61, %v1973_v30  ;;  %v1974_v18 = vadd.f32 %v4137_v31, %v6047_v43  ;;  %v4203_v58 = vpop.f32.mrb[57].mxu0 }
 0x17d   :  { %v4204_v50 = vadd.f32 %v4203_v58, %v4202_v48  ;;  %v4205_v25 = vpop.f32.mrb[58].mxu0 }
 0x17e   :  { %v6137_v12 = vadd.f32 %v4201_v46, %v1974_v18  ;;  %v4138_v21 = vpop.f32.mrb[56].mxu1  ;;  %v4206_v29 = vpop.f32.mrb[59].mxu0 }
 0x17f   :  { %v4139_v26 = vpop.f32.mrb[57].mxu1  ;;  %v4207_v16 = vadd.f32 %v4206_v29, %v4205_v25 }
 0x180   :  { %v4140_v37 = vadd.f32 %v4139_v26, %v4138_v21  ;;  %v4141_v4 = vpop.f32.mrb[58].mxu1 }
 0x181   :  { %v4142_v45 = vpop.f32.mrb[59].mxu1 }
 0x182   :  { %v1975_v7 = vadd.f32 %v4140_v37, %v6061_v34  ;;  %v4143_v44 = vadd.f32 %v4142_v45, %v4141_v4 }
 0x183   :  { %v4208_v33 = vpop.f32.mrb[60].mxu0 }
 0x184   :  { %v6140_v57 = vadd.f32 %v4204_v50, %v1975_v7  ;;  %v1976_v43 = vadd.f32 %v4143_v44, %v6065_v19  ;;  %v4209_v10 = vpop.f32.mrb[61].mxu0 }
 0x185   :  { %v4210_v35 = vadd.f32 %v4209_v10, %v4208_v33  ;;  %v4211_v13 = vpop.f32.mrb[62].mxu0 }
 0x186   :  { %v6143_v8 = vadd.f32 %v4207_v16, %v1976_v43  ;;  %v4144_v15 = vpop.f32.mrb[60].mxu1  ;;  %v4212_v3 = vpop.f32.mrb[63].mxu0 }
 0x187   :  { %v4145_v2 = vpop.f32.mrb[61].mxu1  ;;  %v4213_v55 = vadd.f32 %v4212_v3, %v4211_v13 }
 0x188   :  { %v4146_v47 = vadd.f32 %v4145_v2, %v4144_v15  ;;  %v4147_v22 = vpop.f32.mrb[62].mxu1 }
 0x189   :  { %v4148_v20 = vpop.f32.mrb[63].mxu1 }
 0x18a   :  { %v1977_v34 = vadd.f32 %v4146_v47, %v6085_v42  ;;  %v4149_v53 = vadd.f32 %v4148_v20, %v4147_v22 }
 0x18b   :  { %v4214_v27 = vpop.f32.mrb[64].mxu0 }
 0x18c   :  { %v6146_v41 = vadd.f32 %v4210_v35, %v1977_v34  ;;  %v1978_v19 = vadd.f32 %v4149_v53, %v6087_v28  ;;  %v4215_v39 = vpop.f32.mrb[65].mxu0 }
 0x18d   :  { %v4216_v32 = vadd.f32 %v4215_v39, %v4214_v27  ;;  %v4217_v56 = vpop.f32.mrb[66].mxu0 }
 0x18e   :  { %v6149_v17 = vadd.f32 %v4213_v55, %v1978_v19  ;;  %v4150_v1 = vpop.f32.mrb[64].mxu1  ;;  %v4218_v61 = vpop.f32.mrb[67].mxu0 }
 0x18f   :  { %v4151_v54 = vpop.f32.mrb[65].mxu1  ;;  %v4219_v14 = vadd.f32 %v4218_v61, %v4217_v56 }
 0x190   :  { %v4152_v52 = vadd.f32 %v4151_v54, %v4150_v1  ;;  %v4153_v24 = vpop.f32.mrb[66].mxu1 }
 0x191   :  { %v4154_v23 = vpop.f32.mrb[67].mxu1 }
 0x192   :  { %v1979_v42 = vadd.f32 %v4152_v52, %v6099_v11  ;;  %v4155_v40 = vadd.f32 %v4154_v23, %v4153_v24 }
 0x193   :  { %v4220_v59 = vpop.f32.mrb[68].mxu0 }
 0x194   :  { %v6152_v9 = vadd.f32 %v4216_v32, %v1979_v42  ;;  %v1980_v28 = vadd.f32 %v4155_v40, %v6101_v0  ;;  %v4221_v31 = vpop.f32.mrb[69].mxu0 }
 0x195   :  { %v4222_v48 = vadd.f32 %v4221_v31, %v4220_v59  ;;  %v4223_v21 = vpop.f32.mrb[70].mxu0 }
 0x196   :  { %v6155_v46 = vadd.f32 %v4219_v14, %v1980_v28  ;;  %v4156_v30 = vpop.f32.mrb[68].mxu1  ;;  %v4224_v50 = vpop.f32.mrb[71].mxu0 }
 0x197   :  { %v4157_v18 = vpop.f32.mrb[69].mxu1  ;;  %v4225_v37 = vadd.f32 %v4224_v50, %v4223_v21 }
 0x198   :  { %v4158_v58 = vadd.f32 %v4157_v18, %v4156_v30  ;;  %v4159_v26 = vpop.f32.mrb[70].mxu1 }
 0x199   :  { %v4160_v25 = vpop.f32.mrb[71].mxu1 }
 0x19a   :  { %v1981_v11 = vadd.f32 %v4158_v58, %v6107_v60  ;;  %v4161_v4 = vadd.f32 %v4160_v25, %v4159_v26 }
 0x19b   :  { %v4226_v45 = vpop.f32.mrb[72].mxu0 }
 0x19c   :  { %v6158_v29 = vadd.f32 %v4222_v48, %v1981_v11  ;;  %v1982_v0 = vadd.f32 %v4161_v4, %v6109_v36  ;;  %v4227_v44 = vpop.f32.mrb[73].mxu0 }
 0x19d   :  { %v4228_v33 = vadd.f32 %v4227_v44, %v4226_v45  ;;  %v4229_v15 = vpop.f32.mrb[74].mxu0 }
 0x19e   :  { %v6161_v16 = vadd.f32 %v4225_v37, %v1982_v0  ;;  %v4162_v7 = vpop.f32.mrb[72].mxu1  ;;  %v4230_v35 = vpop.f32.mrb[75].mxu0 }
 0x19f   :  { %v4163_v43 = vpop.f32.mrb[73].mxu1  ;;  %v4231_v47 = vadd.f32 %v4230_v35, %v4229_v15 }
 0x1a0   :  { %v4164_v10 = vadd.f32 %v4163_v43, %v4162_v7  ;;  %v4165_v2 = vpop.f32.mrb[74].mxu1 }
 0x1a1   :  { %v4166_v13 = vpop.f32.mrb[75].mxu1 }
 0x1a2   :  { %v1983_v60 = vadd.f32 %v4164_v10, %v6115_v49  ;;  %v4167_v22 = vadd.f32 %v4166_v13, %v4165_v2 }
 0x1a3   :  { %v4232_v20 = vpop.f32.mrb[76].mxu0 }
 0x1a4   :  { %v6164_v3 = vadd.f32 %v4228_v33, %v1983_v60  ;;  %v1984_v36 = vadd.f32 %v4167_v22, %v6117_v6  ;;  %v4233_v53 = vpop.f32.mrb[77].mxu0 }
 0x1a5   :  { %v4234_v27 = vadd.f32 %v4233_v53, %v4232_v20  ;;  %v4235_v1 = vpop.f32.mrb[78].mxu0 }
 0x1a6   :  { %v6167_v55 = vadd.f32 %v4231_v47, %v1984_v36  ;;  %v4168_v34 = vpop.f32.mrb[76].mxu1  ;;  %v4236_v32 = vpop.f32.mrb[79].mxu0 }
 0x1a7   :  { %v4169_v19 = vpop.f32.mrb[77].mxu1  ;;  %v4237_v52 = vadd.f32 %v4236_v32, %v4235_v1 }
 0x1a8   :  { %v4170_v39 = vadd.f32 %v4169_v19, %v4168_v34  ;;  %v4171_v54 = vpop.f32.mrb[78].mxu1 }
 0x1a9   :  { %v4172_v56 = vpop.f32.mrb[79].mxu1 }
 0x1aa   :  { %v1985_v49 = vadd.f32 %v4170_v39, %v6123_v5  ;;  %v4173_v24 = vadd.f32 %v4172_v56, %v4171_v54 }
 0x1ab   :  { %v4318_v23 = vpop.f32.mrb[80].mxu0 }
 0x1ac   :  { %v6170_v61 = vadd.f32 %v4234_v27, %v1985_v49  ;;  %v1986_v6 = vadd.f32 %v4173_v24, %v6125_v62  ;;  %v4319_v40 = vpop.f32.mrb[81].mxu0 }
 0x1ad   :  { %v4320_v59 = vadd.f32 %v4319_v40, %v4318_v23  ;;  %v4321_v30 = vpop.f32.mrb[82].mxu0 }
 0x1ae   :  { %v6173_v14 = vadd.f32 %v4237_v52, %v1986_v6  ;;  %v4254_v42 = vpop.f32.mrb[80].mxu1  ;;  %v4322_v48 = vpop.f32.mrb[83].mxu0 }
 0x1af   :  { %v4255_v28 = vpop.f32.mrb[81].mxu1  ;;  %v4323_v58 = vadd.f32 %v4322_v48, %v4321_v30 }
 0x1b0   :  { %v4256_v31 = vadd.f32 %v4255_v28, %v4254_v42  ;;  %v4257_v18 = vpop.f32.mrb[82].mxu1 }
 0x1b1   :  { %v4258_v21 = vpop.f32.mrb[83].mxu1 }
 0x1b2   :  { %v2453_v5 = vadd.f32 %v4256_v31, %v6128_v63  ;;  %v4259_v26 = vadd.f32 %v4258_v21, %v4257_v18 }
 0x1b3   :  { %v4324_v25 = vpop.f32.mrb[84].mxu0 }
 0x1b4   :  { %v6176_v50 = vadd.f32 %v4320_v59, %v2453_v5  ;;  %v2454_v62 = vadd.f32 %v4259_v26, %v6131_v38  ;;  %v4325_v4 = vpop.f32.mrb[85].mxu0 }
 0x1b5   :  { %v4326_v45 = vadd.f32 %v4325_v4, %v4324_v25  ;;  %v4327_v7 = vpop.f32.mrb[86].mxu0 }
 0x1b6   :  { %v6179_v37 = vadd.f32 %v4323_v58, %v2454_v62  ;;  %v4260_v11 = vpop.f32.mrb[84].mxu1  ;;  %v4328_v33 = vpop.f32.mrb[87].mxu0 }
 0x1b7   :  { %v4261_v0 = vpop.f32.mrb[85].mxu1  ;;  %v4329_v10 = vadd.f32 %v4328_v33, %v4327_v7 }
 0x1b8   :  { %v4262_v44 = vadd.f32 %v4261_v0, %v4260_v11  ;;  %v4263_v43 = vpop.f32.mrb[86].mxu1 }
 0x1b9   :  { %v4264_v15 = vpop.f32.mrb[87].mxu1 }
 0x1ba   :  { %v2455_v63 = vadd.f32 %v4262_v44, %v6134_v51  ;;  %v4265_v2 = vadd.f32 %v4264_v15, %v4263_v43 }
 0x1bb   :  { %v4330_v13 = vpop.f32.mrb[88].mxu0 }
 0x1bc   :  { %v6182_v35 = vadd.f32 %v4326_v45, %v2455_v63  ;;  %v2456_v38 = vadd.f32 %v4265_v2, %v6137_v12  ;;  %v4331_v22 = vpop.f32.mrb[89].mxu0 }
 0x1bd   :  { %v4332_v20 = vadd.f32 %v4331_v22, %v4330_v13  ;;  %v4333_v34 = vpop.f32.mrb[90].mxu0 }
 0x1be   :  { %v6185_v47 = vadd.f32 %v4329_v10, %v2456_v38  ;;  %v4266_v60 = vpop.f32.mrb[88].mxu1  ;;  %v4334_v27 = vpop.f32.mrb[91].mxu0 }
 0x1bf   :  { %v4267_v36 = vpop.f32.mrb[89].mxu1  ;;  %v4335_v39 = vadd.f32 %v4334_v27, %v4333_v34 }
 0x1c0   :  { %v4268_v53 = vadd.f32 %v4267_v36, %v4266_v60  ;;  %v4269_v19 = vpop.f32.mrb[90].mxu1 }
 0x1c1   :  { %v4270_v1 = vpop.f32.mrb[91].mxu1 }
 0x1c2   :  { %v2457_v51 = vadd.f32 %v4268_v53, %v6140_v57  ;;  %v4271_v54 = vadd.f32 %v4270_v1, %v4269_v19 }
 0x1c3   :  { %v4336_v56 = vpop.f32.mrb[92].mxu0 }
 0x1c4   :  { %v6188_v32 = vadd.f32 %v4332_v20, %v2457_v51  ;;  %v2458_v12 = vadd.f32 %v4271_v54, %v6143_v8  ;;  %v4337_v24 = vpop.f32.mrb[93].mxu0 }
 0x1c5   :  { %v4338_v23 = vadd.f32 %v4337_v24, %v4336_v56  ;;  %v4339_v42 = vpop.f32.mrb[94].mxu0 }
 0x1c6   :  { %v6191_v52 = vadd.f32 %v4335_v39, %v2458_v12  ;;  %v4272_v49 = vpop.f32.mrb[92].mxu1  ;;  %v4340_v59 = vpop.f32.mrb[95].mxu0 }
 0x1c7   :  { %v4273_v6 = vpop.f32.mrb[93].mxu1  ;;  %v4341_v31 = vadd.f32 %v4340_v59, %v4339_v42 }
 0x1c8   :  { %v4274_v40 = vadd.f32 %v4273_v6, %v4272_v49  ;;  %v4275_v28 = vpop.f32.mrb[94].mxu1 }
 0x1c9   :  { %v4276_v30 = vpop.f32.mrb[95].mxu1 }
 0x1ca   :  { %v2459_v57 = vadd.f32 %v4274_v40, %v6146_v41  ;;  %v4277_v18 = vadd.f32 %v4276_v30, %v4275_v28 }
 0x1cb   :  { %v4342_v21 = vpop.f32.mrb[96].mxu0 }
 0x1cc   :  { %v6194_v48 = vadd.f32 %v4338_v23, %v2459_v57  ;;  %v2460_v8 = vadd.f32 %v4277_v18, %v6149_v17  ;;  %v4343_v26 = vpop.f32.mrb[97].mxu0 }
 0x1cd   :  { %v4344_v25 = vadd.f32 %v4343_v26, %v4342_v21  ;;  %v4345_v11 = vpop.f32.mrb[98].mxu0 }
 0x1ce   :  { %v6197_v58 = vadd.f32 %v4341_v31, %v2460_v8  ;;  %v4278_v5 = vpop.f32.mrb[96].mxu1  ;;  %v4346_v45 = vpop.f32.mrb[99].mxu0 }
 0x1cf   :  { %v4279_v62 = vpop.f32.mrb[97].mxu1  ;;  %v4347_v44 = vadd.f32 %v4346_v45, %v4345_v11 }
 0x1d0   :  { %v4280_v4 = vadd.f32 %v4279_v62, %v4278_v5  ;;  %v4281_v0 = vpop.f32.mrb[98].mxu1 }
 0x1d1   :  { %v4282_v7 = vpop.f32.mrb[99].mxu1 }
 0x1d2   :  { %v2461_v41 = vadd.f32 %v4280_v4, %v6152_v9  ;;  %v4283_v43 = vadd.f32 %v4282_v7, %v4281_v0 }
 0x1d3   :  { %v4348_v15 = vpop.f32.mrb[100].mxu0 }
 0x1d4   :  { %v6200_v33 = vadd.f32 %v4344_v25, %v2461_v41  ;;  %v2462_v17 = vadd.f32 %v4283_v43, %v6155_v46  ;;  %v4349_v2 = vpop.f32.mrb[101].mxu0 }
 0x1d5   :  { %v4350_v13 = vadd.f32 %v4349_v2, %v4348_v15  ;;  %v4351_v60 = vpop.f32.mrb[102].mxu0 }
 0x1d6   :  { %v6203_v10 = vadd.f32 %v4347_v44, %v2462_v17  ;;  %v4284_v63 = vpop.f32.mrb[100].mxu1  ;;  %v4352_v20 = vpop.f32.mrb[103].mxu0 }
 0x1d7   :  { %v4285_v38 = vpop.f32.mrb[101].mxu1  ;;  %v4353_v53 = vadd.f32 %v4352_v20, %v4351_v60 }
 0x1d8   :  { %v4286_v22 = vadd.f32 %v4285_v38, %v4284_v63  ;;  %v4287_v36 = vpop.f32.mrb[102].mxu1 }
 0x1d9   :  { %v4288_v34 = vpop.f32.mrb[103].mxu1 }
 0x1da   :  { %v2463_v9 = vadd.f32 %v4286_v22, %v6158_v29  ;;  %v4289_v19 = vadd.f32 %v4288_v34, %v4287_v36 }
 0x1db   :  { %v4354_v1 = vpop.f32.mrb[104].mxu0 }
 0x1dc   :  { %v6206_v27 = vadd.f32 %v4350_v13, %v2463_v9  ;;  %v2464_v46 = vadd.f32 %v4289_v19, %v6161_v16  ;;  %v4355_v54 = vpop.f32.mrb[105].mxu0 }
 0x1dd   :  { %v4356_v56 = vadd.f32 %v4355_v54, %v4354_v1  ;;  %v4357_v49 = vpop.f32.mrb[106].mxu0 }
 0x1de   :  { %v6209_v39 = vadd.f32 %v4353_v53, %v2464_v46  ;;  %v4290_v51 = vpop.f32.mrb[104].mxu1  ;;  %v4358_v23 = vpop.f32.mrb[107].mxu0 }
 0x1df   :  { %v4291_v12 = vpop.f32.mrb[105].mxu1  ;;  %v4359_v40 = vadd.f32 %v4358_v23, %v4357_v49 }
 0x1e0   :  { %v4292_v24 = vadd.f32 %v4291_v12, %v4290_v51  ;;  %v4293_v6 = vpop.f32.mrb[106].mxu1 }
 0x1e1   :  { %v4294_v42 = vpop.f32.mrb[107].mxu1 }
 0x1e2   :  { %v2465_v29 = vadd.f32 %v4292_v24, %v6164_v3  ;;  %v4295_v28 = vadd.f32 %v4294_v42, %v4293_v6 }
 0x1e3   :  { %v4360_v30 = vpop.f32.mrb[108].mxu0 }
 0x1e4   :  { %v6212_v59 = vadd.f32 %v4356_v56, %v2465_v29  ;;  %v2466_v16 = vadd.f32 %v4295_v28, %v6167_v55  ;;  %v4361_v18 = vpop.f32.mrb[109].mxu0 }
 0x1e5   :  { %v4362_v21 = vadd.f32 %v4361_v18, %v4360_v30  ;;  %v4363_v5 = vpop.f32.mrb[110].mxu0 }
 0x1e6   :  { %v6215_v31 = vadd.f32 %v4359_v40, %v2466_v16  ;;  %v4296_v57 = vpop.f32.mrb[108].mxu1  ;;  %v4364_v25 = vpop.f32.mrb[111].mxu0 }
 0x1e7   :  { %v4297_v8 = vpop.f32.mrb[109].mxu1  ;;  %v4365_v4 = vadd.f32 %v4364_v25, %v4363_v5 }
 0x1e8   :  { %v4298_v26 = vadd.f32 %v4297_v8, %v4296_v57  ;;  %v4299_v62 = vpop.f32.mrb[110].mxu1 }
 0x1e9   :  { %v4300_v11 = vpop.f32.mrb[111].mxu1 }
 0x1ea   :  { %v2467_v3 = vadd.f32 %v4298_v26, %v6170_v61  ;;  %v4301_v0 = vadd.f32 %v4300_v11, %v4299_v62 }
 0x1eb   :  { %v4446_v7 = vpop.f32.mrb[112].mxu0 }
 0x1ec   :  { %v6218_v45 = vadd.f32 %v4362_v21, %v2467_v3  ;;  %v2468_v55 = vadd.f32 %v4301_v0, %v6173_v14  ;;  %v4447_v43 = vpop.f32.mrb[113].mxu0 }
 0x1ed   :  { %v4448_v15 = vadd.f32 %v4447_v43, %v4446_v7  ;;  %v4449_v63 = vpop.f32.mrb[114].mxu0 }
 0x1ee   :  { %v6221_v44 = vadd.f32 %v4365_v4, %v2468_v55  ;;  %v4382_v41 = vpop.f32.mrb[112].mxu1  ;;  %v4450_v13 = vpop.f32.mrb[115].mxu0 }
 0x1ef   :  { %v4383_v17 = vpop.f32.mrb[113].mxu1  ;;  %v4451_v22 = vadd.f32 %v4450_v13, %v4449_v63 }
 0x1f0   :  { %v4384_v2 = vadd.f32 %v4383_v17, %v4382_v41  ;;  %v4385_v38 = vpop.f32.mrb[114].mxu1 }
 0x1f1   :  { %v4386_v60 = vpop.f32.mrb[115].mxu1 }
 0x1f2   :  { %v3015_v61 = vadd.f32 %v4384_v2, %v6176_v50  ;;  %v4387_v36 = vadd.f32 %v4386_v60, %v4385_v38 }
 0x1f3   :  { %v4452_v14 = vpop.f32.mrb[116].mxu0 }
 0x1f4   :  { %v3256_v20 = vadd.f32 %v4448_v15, %v3015_v61  ;;  %v3016_v34 = vadd.f32 %v4387_v36, %v6179_v37  ;;  %v4453_v19 = vpop.f32.mrb[117].mxu0 }
 0x1f5   :  { %v4454_v1 = vadd.f32 %v4453_v19, %v4452_v14  ;;  %v4455_v51 = vpop.f32.mrb[118].mxu0 }
 0x1f6   :  { %3272 = vst [vmem:[%s6290_s3] sm:$0xff] %v3256_v20  ;;  %v3257_v53 = vadd.f32 %v4451_v22, %v3016_v34  ;;  %v4388_v9 = vpop.f32.mrb[116].mxu1  ;;  %v4456_v12 = vpop.f32.mrb[119].mxu0 }
 0x1f7   :  { %v4389_v46 = vpop.f32.mrb[117].mxu1  ;;  %v4457_v37 = vadd.f32 %v4456_v12, %v4455_v51 }
 0x1f8   :  { %3273 = vst [vmem:[%s6290_s3 + $0x8] sm:$0xff] %v3257_v53  ;;  %v4390_v50 = vadd.f32 %v4389_v46, %v4388_v9  ;;  %v4391_v54 = vpop.f32.mrb[118].mxu1 }
 0x1f9   :  { %v4392_v56 = vpop.f32.mrb[119].mxu1 }
 0x1fa   :  { %v3017_v49 = vadd.f32 %v4390_v50, %v6182_v35  ;;  %v4393_v24 = vadd.f32 %v4392_v56, %v4391_v54 }
 0x1fb   :  { %v4458_v42 = vpop.f32.mrb[120].mxu0 }
 0x1fc   :  { %v3258_v6 = vadd.f32 %v4454_v1, %v3017_v49  ;;  %v3018_v23 = vadd.f32 %v4393_v24, %v6185_v47  ;;  %v4459_v28 = vpop.f32.mrb[121].mxu0 }
 0x1fd   :  { %v4460_v30 = vadd.f32 %v4459_v28, %v4458_v42  ;;  %v4461_v57 = vpop.f32.mrb[122].mxu0 }
 0x1fe   :  { %3274 = vst [vmem:[%s6290_s3 + $0x10] sm:$0xff] %v3258_v6  ;;  %v3259_v40 = vadd.f32 %v4457_v37, %v3018_v23  ;;  %v4394_v29 = vpop.f32.mrb[120].mxu1  ;;  %v4462_v8 = vpop.f32.mrb[123].mxu0 }
 0x1ff   :  { %v4395_v16 = vpop.f32.mrb[121].mxu1  ;;  %v4463_v47 = vadd.f32 %v4462_v8, %v4461_v57 }
 0x200   :  { %3275 = vst [vmem:[%s6290_s3 + $0x18] sm:$0xff] %v3259_v40  ;;  %v4396_v35 = vadd.f32 %v4395_v16, %v4394_v29  ;;  %v4397_v18 = vpop.f32.mrb[122].mxu1 }
 0x201   :  { %v4398_v21 = vpop.f32.mrb[123].mxu1 }
 0x202   :  { %v3019_v5 = vadd.f32 %v4396_v35, %v6188_v32  ;;  %v4399_v26 = vadd.f32 %v4398_v21, %v4397_v18 }
 0x203   :  { %v4464_v11 = vpop.f32.mrb[124].mxu0 }
 0x204   :  { %v3260_v62 = vadd.f32 %v4460_v30, %v3019_v5  ;;  %v3020_v25 = vadd.f32 %v4399_v26, %v6191_v52  ;;  %v4465_v0 = vpop.f32.mrb[125].mxu0 }
 0x205   :  { %v4466_v7 = vadd.f32 %v4465_v0, %v4464_v11  ;;  %v4467_v41 = vpop.f32.mrb[126].mxu0 }
 0x206   :  { %3276 = vst [vmem:[%s6290_s3 + $0x20] sm:$0xff] %v3260_v62  ;;  %v3261_v4 = vadd.f32 %v4463_v47, %v3020_v25  ;;  %v4400_v3 = vpop.f32.mrb[124].mxu1  ;;  %v4468_v17 = vpop.f32.mrb[127].mxu0 }
 0x207   :  { %v4401_v55 = vpop.f32.mrb[125].mxu1  ;;  %v4469_v52 = vadd.f32 %v4468_v17, %v4467_v41 }
 0x208   :  { %3277 = vst [vmem:[%s6290_s3 + $0x28] sm:$0xff] %v3261_v4  ;;  %v4402_v32 = vadd.f32 %v4401_v55, %v4400_v3  ;;  %v4403_v43 = vpop.f32.mrb[126].mxu1 }
 0x209   :  { %v4404_v15 = vpop.f32.mrb[127].mxu1 }
 0x20a   :  { %v3021_v63 = vadd.f32 %v4402_v32, %v6194_v48  ;;  %v4405_v2 = vadd.f32 %v4404_v15, %v4403_v43 }
 0x20b   :  { %v4470_v60 = vpop.f32.mrb[128].mxu0 }
 0x20c   :  { %v3262_v38 = vadd.f32 %v4466_v7, %v3021_v63  ;;  %v3022_v13 = vadd.f32 %v4405_v2, %v6197_v58  ;;  %v4471_v36 = vpop.f32.mrb[129].mxu0 }
 0x20d   :  { %v4472_v34 = vadd.f32 %v4471_v36, %v4470_v60  ;;  %v4473_v14 = vpop.f32.mrb[130].mxu0 }
 0x20e   :  { %3278 = vst [vmem:[%s6290_s3 + $0x30] sm:$0xff] %v3262_v38  ;;  %v3263_v22 = vadd.f32 %v4469_v52, %v3022_v13  ;;  %v4406_v61 = vpop.f32.mrb[128].mxu1  ;;  %v4474_v9 = vpop.f32.mrb[131].mxu0 }
 0x20f   :  { %v4407_v20 = vpop.f32.mrb[129].mxu1  ;;  %v4475_v58 = vadd.f32 %v4474_v9, %v4473_v14 }
 0x210   :  { %3279 = vst [vmem:[%s6290_s3 + $0x38] sm:$0xff] %v3263_v22  ;;  %v4408_v48 = vadd.f32 %v4407_v20, %v4406_v61  ;;  %v4409_v53 = vpop.f32.mrb[130].mxu1 }
 0x211   :  { %v4410_v19 = vpop.f32.mrb[131].mxu1 }
 0x212   :  { %v3023_v46 = vadd.f32 %v4408_v48, %v6200_v33  ;;  %v4411_v1 = vadd.f32 %v4410_v19, %v4409_v53 }
 0x213   :  { %v4476_v54 = vpop.f32.mrb[132].mxu0 }
 0x214   :  { %v3264_v51 = vadd.f32 %v4472_v34, %v3023_v46  ;;  %v3024_v50 = vadd.f32 %v4411_v1, %v6203_v10  ;;  %v4477_v37 = vpop.f32.mrb[133].mxu0 }
 0x215   :  { %v4478_v24 = vadd.f32 %v4477_v37, %v4476_v54  ;;  %v4479_v6 = vpop.f32.mrb[134].mxu0 }
 0x216   :  { %3280 = vst [vmem:[%s6290_s3 + $0x40] sm:$0xff] %v3264_v51  ;;  %v3265_v12 = vadd.f32 %v4475_v58, %v3024_v50  ;;  %v4412_v56 = vpop.f32.mrb[132].mxu1  ;;  %v4480_v42 = vpop.f32.mrb[135].mxu0 }
 0x217   :  { %v4413_v49 = vpop.f32.mrb[133].mxu1  ;;  %v4481_v10 = vadd.f32 %v4480_v42, %v4479_v6 }
 0x218   :  { %3281 = vst [vmem:[%s6290_s3 + $0x48] sm:$0xff] %v3265_v12  ;;  %v4414_v33 = vadd.f32 %v4413_v49, %v4412_v56  ;;  %v4415_v23 = vpop.f32.mrb[134].mxu1 }
 0x219   :  { %v4416_v40 = vpop.f32.mrb[135].mxu1 }
 0x21a   :  { %v3025_v29 = vadd.f32 %v4414_v33, %v6206_v27  ;;  %v4417_v28 = vadd.f32 %v4416_v40, %v4415_v23 }
 0x21b   :  { %v4482_v57 = vpop.f32.mrb[136].mxu0 }
 0x21c   :  { %v3266_v16 = vadd.f32 %v4478_v24, %v3025_v29  ;;  %v3026_v30 = vadd.f32 %v4417_v28, %v6209_v39  ;;  %v4483_v8 = vpop.f32.mrb[137].mxu0 }
 0x21d   :  { %v4484_v47 = vadd.f32 %v4483_v8, %v4482_v57  ;;  %v4485_v5 = vpop.f32.mrb[138].mxu0 }
 0x21e   :  { %3282 = vst [vmem:[%s6290_s3 + $0x50] sm:$0xff] %v3266_v16  ;;  %v3267_v35 = vadd.f32 %v4481_v10, %v3026_v30  ;;  %v4418_v18 = vpop.f32.mrb[136].mxu1  ;;  %v4486_v62 = vpop.f32.mrb[139].mxu0 }
 0x21f   :  { %v4419_v21 = vpop.f32.mrb[137].mxu1  ;;  %v4487_v39 = vadd.f32 %v4486_v62, %v4485_v5 }
 0x220   :  { %3283 = vst [vmem:[%s6290_s3 + $0x58] sm:$0xff] %v3267_v35  ;;  %v4420_v27 = vadd.f32 %v4419_v21, %v4418_v18  ;;  %v4421_v26 = vpop.f32.mrb[138].mxu1 }
 0x221   :  { %v4422_v25 = vpop.f32.mrb[139].mxu1 }
 0x222   :  { %v3027_v11 = vadd.f32 %v4420_v27, %v6212_v59  ;;  %v4423_v4 = vadd.f32 %v4422_v25, %v4421_v26 }
 0x223   :  { %v4488_v55 = vpop.f32.mrb[140].mxu0 }
 0x224   :  { %v3268_v3 = vadd.f32 %v4484_v47, %v3027_v11  ;;  %v3028_v0 = vadd.f32 %v4423_v4, %v6215_v31  ;;  %v4489_v32 = vpop.f32.mrb[141].mxu0 }
 0x225   :  { %v4490_v17 = vadd.f32 %v4489_v32, %v4488_v55  ;;  %v4491_v15 = vpop.f32.mrb[142].mxu0 }
 0x226   :  { %3284 = vst [vmem:[%s6290_s3 + $0x60] sm:$0xff] %v3268_v3  ;;  %v3269_v7 = vadd.f32 %v4487_v39, %v3028_v0  ;;  %v4424_v41 = vpop.f32.mrb[140].mxu1  ;;  %v4492_v63 = vpop.f32.mrb[143].mxu0 }
 0x227   :  { %v4425_v43 = vpop.f32.mrb[141].mxu1  ;;  %v4493_v31 = vadd.f32 %v4492_v63, %v4491_v15 }
 0x228   :  { %3285 = vst [vmem:[%s6290_s3 + $0x68] sm:$0xff] %v3269_v7  ;;  %v4426_v59 = vadd.f32 %v4425_v43, %v4424_v41  ;;  %v4427_v52 = vpop.f32.mrb[142].mxu1 }
 0x229   :  { %v4428_v2 = vpop.f32.mrb[143].mxu1 }
 0x22a   :  { %v3029_v38 = vadd.f32 %v4426_v59, %v6218_v45  ;;  %v4429_v13 = vadd.f32 %v4428_v2, %v4427_v52 }
 0x22c   :  { %v3270_v60 = vadd.f32 %v4490_v17, %v3029_v38  ;;  %v3030_v22 = vadd.f32 %v4429_v13, %v6221_v44 }
 0x22e   :  { %3286 = vst [vmem:[%s6290_s3 + $0x70] sm:$0xff] %v3270_v60  ;;  %v3271_v61 = vadd.f32 %v4493_v31, %v3030_v22 }
 0x230   :  { %3287 = vst [vmem:[%s6290_s3 + $0x78] sm:$0xff] %v3271_v61 }
 0x231   :  { %3292 = vsyncpa [#allocation6], 1 }

</bundles_post_ra>
